<compile_context>
chip_gen: v7x
topology: tpu7x:2x2x1
jax: 0.10.0
libtpu: 0.0.40
codegen_flags: <defaults>
</compile_context>

<pallas_src>
import math
from functools import partial

import jax
import jax.numpy as jnp
from jax.experimental import pallas as pl
from jax.experimental.pallas import tpu as pltpu  # noqa: F401  (TPU backend)

# ----------------------------- model config (small) -----------------------------
INPUT_SIZE = 4
D_MODEL = 32
NHEAD = 4
NUM_LAYERS = 2
D_FF = 64
PRED_LEN = 6
BATCH = 2
SEQ = 8
MAX_LEN = 128


# ----------------------------- in-kernel math helpers -----------------------------
def _erf_f32(x):
    # Rational approximation used by XLA for f32 erf (clamp to [-4, 4]).
    alpha = (0.00022905065861350646, 0.0034082910107109506, 0.050955695062380861,
             0.18520832239976145, 1.128379143519084)
    beta = (-1.1791602954361697e-07, 2.3547966471313185e-05, 0.0010179625278914885,
            0.014070470171167667, 0.11098505178285362, 0.49746925110067538, 1.0)
    x = jnp.clip(x, -4.0, 4.0)
    x2 = x * x
    num = jnp.full_like(x2, alpha[0])
    for c in alpha[1:]:
        num = num * x2 + c
    den = jnp.full_like(x2, beta[0])
    for c in beta[1:]:
        den = den * x2 + c
    return x * num / den


def _gelu_exact(x):
    # F.gelu default ("none") = 0.5*x*(1+erf(x/sqrt(2)))
    return 0.5 * x * (1.0 + _erf_f32(x * (1.0 / math.sqrt(2.0))))


def _layernorm(x, gamma, beta, eps=1e-5):
    mu = jnp.mean(x, axis=-1, keepdims=True)
    xc = x - mu
    var = jnp.mean(xc * xc, axis=-1, keepdims=True)
    return xc * jax.lax.rsqrt(var + eps) * gamma + beta


def _softmax_last(x):
    x = x - jnp.max(x, axis=-1, keepdims=True)
    e = jnp.exp(x)
    return e / jnp.sum(e, axis=-1, keepdims=True)


# ----------------------------- fused Pallas kernel -----------------------------
def fused_forecast_kernel(
    src_ref, w_in_ref, pe_bias_ref,
    wqkv_ref, bqkv_ref, wo_ref, bo_ref,
    g1_ref, be1_ref,
    w1_ref, b1_ref, w2_ref, b2_ref, g2_ref, be2_ref,
    w_dec_ref, b_dec_ref,
    o_ref,
    *, nhead, num_layers, batch, seq,
):
    B, S = batch, seq
    src = src_ref[...].astype(jnp.float32)                      # (B, S, I)
    in_dim = src.shape[-1]
    d_model = w_in_ref.shape[-1]
    hd = d_model // nhead

    # ---- input linear on all B*S rows at once (bias folded into pe_bias) ----
    xf = jnp.dot(src.reshape(B * S, in_dim), w_in_ref[...],
                 preferred_element_type=jnp.float32)             # (B*S, D)

    # ---- positional encoding + input bias (dropout = identity) ----
    xf = (xf.reshape(B, S, d_model) + pe_bias_ref[...][None, :, :]).reshape(B * S, d_model)

    # ---- transformer blocks (static Python loop over stacked layer params) ----
    for l in range(num_layers):
        # fused QKV projection: one (B*S, D) x (D, 3D) matmul
        # (softmax scale is pre-folded into the Q columns of wqkv/bqkv)
        qkv = jnp.dot(xf, wqkv_ref[l], preferred_element_type=jnp.float32) + bqkv_ref[l]
        q3 = qkv[:, 0 * d_model:1 * d_model].reshape(B, S, d_model)
        k3 = qkv[:, 1 * d_model:2 * d_model].reshape(B, S, d_model)
        v3 = qkv[:, 2 * d_model:3 * d_model].reshape(B, S, d_model)

        head_outs = []
        for h in range(nhead):
            sl = slice(h * hd, (h + 1) * hd)
            sc = jnp.einsum('bqd,bkd->bqk', q3[:, :, sl], k3[:, :, sl],
                            preferred_element_type=jnp.float32)   # (B, S, S)
            p = _softmax_last(sc)
            head_outs.append(jnp.einsum('bqk,bkd->bqd', p, v3[:, :, sl],
                                        preferred_element_type=jnp.float32))
        attn = jnp.concatenate(head_outs, axis=-1).reshape(B * S, d_model)
        attn = jnp.dot(attn, wo_ref[l], preferred_element_type=jnp.float32) + bo_ref[l]

        # residual + norm1
        x1 = _layernorm(xf + attn, g1_ref[l], be1_ref[l])

        # feed-forward: linear2(gelu(linear1(x)))
        h1 = jnp.dot(x1, w1_ref[l], preferred_element_type=jnp.float32) + b1_ref[l]
        h1 = _gelu_exact(h1)
        ffn = jnp.dot(h1, w2_ref[l], preferred_element_type=jnp.float32) + b2_ref[l]

        # residual + norm2
        xf = _layernorm(x1 + ffn, g2_ref[l], be2_ref[l])

    # ---- last time step + decoder (kept in VMEM, no HBM round trip) ----
    last = xf.reshape(B, S, d_model)[:, S - 1, :]                 # (B, D)
    out = jnp.dot(last, w_dec_ref[...],
                  preferred_element_type=jnp.float32) + b_dec_ref[...]
    o_ref[...] = out.astype(o_ref.dtype)


# ----------------------------- parameter init (deterministic) -----------------------------
def _linear_init(key, fan_in, fan_out):
    # mimics torch.nn.Linear default: U(-1/sqrt(fan_in), 1/sqrt(fan_in)); store W^T
    bound = 1.0 / math.sqrt(fan_in)
    kw, kb = jax.random.split(key)
    w_t = jax.random.uniform(kw, (fan_in, fan_out), jnp.float32, -bound, bound)
    b = jax.random.uniform(kb, (fan_out,), jnp.float32, -bound, bound)
    return w_t, b


def make_positional_encoding(d_model, max_len):
    position = jnp.arange(max_len, dtype=jnp.float32)[:, None]
    div_term = jnp.exp(
        jnp.arange(0, d_model, 2, dtype=jnp.float32) * (-math.log(10000.0) / d_model)
    )
    pe = jnp.zeros((max_len, d_model), jnp.float32)
    pe = pe.at[:, 0::2].set(jnp.sin(position * div_term))
    pe = pe.at[:, 1::2].set(jnp.cos(position * div_term))
    return pe


def init_params(key):
    keys = jax.random.split(key, 4 + NUM_LAYERS)
    params = {}

    w_in_t, b_in = _linear_init(keys[0], INPUT_SIZE, D_MODEL)
    params["w_in_t"] = w_in_t
    # fold the input-linear bias into the positional-encoding table (zero per-call cost)
    params["pe_bias"] = make_positional_encoding(D_MODEL, MAX_LEN) + b_in[None, :]

    w_dec_t, b_dec = _linear_init(keys[1], D_MODEL, INPUT_SIZE * PRED_LEN)
    params["w_dec_t"] = w_dec_t
    params["b_dec"] = b_dec.reshape(1, -1)

    scale = (D_MODEL // NHEAD) ** -0.5
    layers = []
    for li in range(NUM_LAYERS):
        lk = jax.random.split(keys[4 + li], 8)
        # in_proj (3D x D) for q/k/v, stored transposed as one fused (D, 3D) weight
        bound = 1.0 / math.sqrt(D_MODEL)
        in_proj_w = jax.random.uniform(lk[0], (3 * D_MODEL, D_MODEL), jnp.float32, -bound, bound)
        in_proj_b = jax.random.uniform(lk[1], (3 * D_MODEL,), jnp.float32, -bound, bound)
        wqkv_t = in_proj_w.T                                    # (D, 3D)
        # fold softmax scale 1/sqrt(head_dim) into the Q columns
        wqkv_t = wqkv_t.at[:, :D_MODEL].multiply(scale)
        bqkv = in_proj_b.at[:D_MODEL].multiply(scale)

        wo_t, bo = _linear_init(lk[2], D_MODEL, D_MODEL)
        w1_t, b1 = _linear_init(lk[3], D_MODEL, D_FF)
        w2_t, b2 = _linear_init(lk[4], D_FF, D_MODEL)
        layers.append(dict(
            wqkv_t=wqkv_t,
            bqkv=bqkv.reshape(1, -1),
            wo_t=wo_t, bo=bo.reshape(1, -1),
            ln1_g=jnp.ones((1, D_MODEL), jnp.float32),
            ln1_b=jnp.zeros((1, D_MODEL), jnp.float32),
            w1_t=w1_t, b1=b1.reshape(1, -1),
            w2_t=w2_t, b2=b2.reshape(1, -1),
            ln2_g=jnp.ones((1, D_MODEL), jnp.float32),
            ln2_b=jnp.zeros((1, D_MODEL), jnp.float32),
        ))
    # stack per-layer params along a leading layer axis (one DMA per param type)
    params["layers"] = {k: jnp.stack([lp[k] for lp in layers]) for k in layers[0]}
    return params


# ----------------------------- full forward (single pallas_call) -----------------------------
@jax.jit
def transformer_forecast_forward(src, params):
    b, s, _ = src.shape
    lp = params["layers"]
    out = pl.pallas_call(
        partial(fused_forecast_kernel, nhead=NHEAD, num_layers=NUM_LAYERS,
                batch=b, seq=s),
        out_shape=jax.ShapeDtypeStruct((b, PRED_LEN * INPUT_SIZE), jnp.float32),
    )(
        src,
        params["w_in_t"], params["pe_bias"][:s],
        lp["wqkv_t"], lp["bqkv"],
        lp["wo_t"], lp["bo"], lp["ln1_g"], lp["ln1_b"],
        lp["w1_t"], lp["b1"], lp["w2_t"], lp["b2"],
        lp["ln2_g"], lp["ln2_b"],
        params["w_dec_t"], params["b_dec"],
    )
    return out.reshape(-1, PRED_LEN, INPUT_SIZE)


if __name__ == "__main__":
    key = jax.random.PRNGKey(0)
    params = init_params(key)
    src = jax.random.normal(jax.random.fold_in(key, 123), (BATCH, SEQ, INPUT_SIZE), jnp.float32)

    out = transformer_forecast_forward(src, params)
    out = jax.block_until_ready(out)

    assert out.shape == (BATCH, PRED_LEN, INPUT_SIZE), out.shape
    assert jnp.all(jnp.isfinite(out))
    print("KERNEL_OK")
</pallas_src>

<mosaic_0001>
module attributes {stable_mosaic.version = 11 : i64} {
  func.func @fused_forecast_kernel(%arg0: memref<2x8x4xf32, #tpu.memory_space<vmem>>, %arg1: memref<4x32xf32, #tpu.memory_space<vmem>>, %arg2: memref<8x32xf32, #tpu.memory_space<vmem>>, %arg3: memref<2x32x96xf32, #tpu.memory_space<vmem>>, %arg4: memref<2x1x96xf32, #tpu.memory_space<vmem>>, %arg5: memref<2x32x32xf32, #tpu.memory_space<vmem>>, %arg6: memref<2x1x32xf32, #tpu.memory_space<vmem>>, %arg7: memref<2x1x32xf32, #tpu.memory_space<vmem>>, %arg8: memref<2x1x32xf32, #tpu.memory_space<vmem>>, %arg9: memref<2x32x64xf32, #tpu.memory_space<vmem>>, %arg10: memref<2x1x64xf32, #tpu.memory_space<vmem>>, %arg11: memref<2x64x32xf32, #tpu.memory_space<vmem>>, %arg12: memref<2x1x32xf32, #tpu.memory_space<vmem>>, %arg13: memref<2x1x32xf32, #tpu.memory_space<vmem>>, %arg14: memref<2x1x32xf32, #tpu.memory_space<vmem>>, %arg15: memref<32x24xf32, #tpu.memory_space<vmem>>, %arg16: memref<1x24xf32, #tpu.memory_space<vmem>>, %arg17: memref<2x24xf32, #tpu.memory_space<vmem>>) attributes {dimension_semantics = [], scalar_prefetch = 0 : i64, scratch_operands = 0 : i64, tpu.core_type = #tpu.core_type<tc>} {
    %c0 = arith.constant 0 : index
    %c0_0 = arith.constant 0 : index
    %c0_1 = arith.constant 0 : index
    %0 = vector.load %arg0[%c0, %c0_0, %c0_1] : memref<2x8x4xf32, #tpu.memory_space<vmem>>, vector<2x8x4xf32>
    %1 = vector.shape_cast %0 : vector<2x8x4xf32> to vector<16x4xf32>
    %c0_2 = arith.constant 0 : index
    %c0_3 = arith.constant 0 : index
    %2 = vector.load %arg1[%c0_2, %c0_3] : memref<4x32xf32, #tpu.memory_space<vmem>>, vector<4x32xf32>
    %cst = arith.constant dense<0.000000e+00> : vector<16x32xf32>
    %3 = tpu.matmul %1, %2, %cst {dimension_numbers = #tpu.dot_dimension_numbers<[1], [0], [0], [1], [0, 0, 1, 1], [], []>} : vector<16x4xf32>, vector<4x32xf32>, vector<16x32xf32> -> vector<16x32xf32>
    %4 = vector.shape_cast %3 : vector<16x32xf32> to vector<2x8x32xf32>
    %c0_4 = arith.constant 0 : index
    %c0_5 = arith.constant 0 : index
    %5 = vector.load %arg2[%c0_4, %c0_5] : memref<8x32xf32, #tpu.memory_space<vmem>>, vector<8x32xf32>
    %6 = vector.shape_cast %5 : vector<8x32xf32> to vector<1x8x32xf32>
    %7 = vector.broadcast %6 : vector<1x8x32xf32> to vector<2x8x32xf32>
    %8 = arith.addf %4, %7 : vector<2x8x32xf32>
    %9 = vector.shape_cast %8 : vector<2x8x32xf32> to vector<16x32xf32>
    %c0_6 = arith.constant 0 : index
    %c0_7 = arith.constant 0 : index
    %c0_8 = arith.constant 0 : index
    %10 = vector.load %arg3[%c0_6, %c0_7, %c0_8] : memref<2x32x96xf32, #tpu.memory_space<vmem>>, vector<1x32x96xf32>
    %11 = vector.shape_cast %10 : vector<1x32x96xf32> to vector<32x96xf32>
    %cst_9 = arith.constant dense<0.000000e+00> : vector<16x96xf32>
    %12 = tpu.matmul %9, %11, %cst_9 {dimension_numbers = #tpu.dot_dimension_numbers<[1], [0], [0], [1], [0, 0, 1, 1], [], []>} : vector<16x32xf32>, vector<32x96xf32>, vector<16x96xf32> -> vector<16x96xf32>
    %c0_10 = arith.constant 0 : index
    %c0_11 = arith.constant 0 : index
    %c0_12 = arith.constant 0 : index
    %13 = vector.load %arg4[%c0_10, %c0_11, %c0_12] : memref<2x1x96xf32, #tpu.memory_space<vmem>>, vector<1x1x96xf32>
    %14 = vector.shape_cast %13 : vector<1x1x96xf32> to vector<1x96xf32>
    %15 = vector.broadcast %14 : vector<1x96xf32> to vector<16x96xf32>
    %16 = arith.addf %12, %15 : vector<16x96xf32>
    %17 = vector.extract_strided_slice %16 {offsets = [0, 0], sizes = [16, 32], strides = [1, 1]} : vector<16x96xf32> to vector<16x32xf32>
    %18 = vector.shape_cast %17 : vector<16x32xf32> to vector<2x8x32xf32>
    %19 = vector.extract_strided_slice %16 {offsets = [0, 32], sizes = [16, 32], strides = [1, 1]} : vector<16x96xf32> to vector<16x32xf32>
    %20 = vector.shape_cast %19 : vector<16x32xf32> to vector<2x8x32xf32>
    %21 = vector.extract_strided_slice %16 {offsets = [0, 64], sizes = [16, 32], strides = [1, 1]} : vector<16x96xf32> to vector<16x32xf32>
    %22 = vector.shape_cast %21 : vector<16x32xf32> to vector<2x8x32xf32>
    %23 = vector.extract_strided_slice %18 {offsets = [0, 0, 0], sizes = [2, 8, 8], strides = [1, 1, 1]} : vector<2x8x32xf32> to vector<2x8x8xf32>
    %24 = vector.extract_strided_slice %20 {offsets = [0, 0, 0], sizes = [2, 8, 8], strides = [1, 1, 1]} : vector<2x8x32xf32> to vector<2x8x8xf32>
    "tpu.trace_start"() <{level = 10 : i32, message = "bqd,bkd->bqk"}> : () -> ()
    %cst_13 = arith.constant dense<0.000000e+00> : vector<2x8x8xf32>
    %25 = tpu.matmul %23, %24, %cst_13 {dimension_numbers = #tpu.dot_dimension_numbers<[2], [2], [1], [1], [0, 0, 0, 1, 1, 1], [0], [0]>} : vector<2x8x8xf32>, vector<2x8x8xf32>, vector<2x8x8xf32> -> vector<2x8x8xf32>
    "tpu.trace_stop"() : () -> ()
    %cst_14 = arith.constant dense<0xFF800000> : vector<2x8xf32>
    %26 = vector.multi_reduction <maximumf>, %25, %cst_14 [2] : vector<2x8x8xf32> to vector<2x8xf32>
    %27 = vector.shape_cast %26 : vector<2x8xf32> to vector<2x8x1xf32>
    %28 = vector.broadcast %27 : vector<2x8x1xf32> to vector<2x8x8xf32>
    %29 = arith.subf %25, %28 : vector<2x8x8xf32>
    %30 = math.exp %29 : vector<2x8x8xf32>
    %cst_15 = arith.constant dense<0.000000e+00> : vector<2x8xf32>
    %31 = vector.multi_reduction <add>, %30, %cst_15 [2] : vector<2x8x8xf32> to vector<2x8xf32>
    %32 = vector.shape_cast %31 : vector<2x8xf32> to vector<2x8x1xf32>
    %33 = vector.broadcast %32 : vector<2x8x1xf32> to vector<2x8x8xf32>
    %34 = arith.divf %30, %33 : vector<2x8x8xf32>
    %35 = vector.extract_strided_slice %22 {offsets = [0, 0, 0], sizes = [2, 8, 8], strides = [1, 1, 1]} : vector<2x8x32xf32> to vector<2x8x8xf32>
    "tpu.trace_start"() <{level = 10 : i32, message = "bqk,bkd->bqd"}> : () -> ()
    %cst_16 = arith.constant dense<0.000000e+00> : vector<2x8x8xf32>
    %36 = tpu.matmul %34, %35, %cst_16 {dimension_numbers = #tpu.dot_dimension_numbers<[2], [1], [1], [2], [0, 0, 0, 1, 1, 2], [0], [0]>} : vector<2x8x8xf32>, vector<2x8x8xf32>, vector<2x8x8xf32> -> vector<2x8x8xf32>
    "tpu.trace_stop"() : () -> ()
    %37 = vector.extract_strided_slice %18 {offsets = [0, 0, 8], sizes = [2, 8, 8], strides = [1, 1, 1]} : vector<2x8x32xf32> to vector<2x8x8xf32>
    %38 = vector.extract_strided_slice %20 {offsets = [0, 0, 8], sizes = [2, 8, 8], strides = [1, 1, 1]} : vector<2x8x32xf32> to vector<2x8x8xf32>
    "tpu.trace_start"() <{level = 10 : i32, message = "bqd,bkd->bqk"}> : () -> ()
    %cst_17 = arith.constant dense<0.000000e+00> : vector<2x8x8xf32>
    %39 = tpu.matmul %37, %38, %cst_17 {dimension_numbers = #tpu.dot_dimension_numbers<[2], [2], [1], [1], [0, 0, 0, 1, 1, 1], [0], [0]>} : vector<2x8x8xf32>, vector<2x8x8xf32>, vector<2x8x8xf32> -> vector<2x8x8xf32>
    "tpu.trace_stop"() : () -> ()
    %cst_18 = arith.constant dense<0xFF800000> : vector<2x8xf32>
    %40 = vector.multi_reduction <maximumf>, %39, %cst_18 [2] : vector<2x8x8xf32> to vector<2x8xf32>
    %41 = vector.shape_cast %40 : vector<2x8xf32> to vector<2x8x1xf32>
    %42 = vector.broadcast %41 : vector<2x8x1xf32> to vector<2x8x8xf32>
    %43 = arith.subf %39, %42 : vector<2x8x8xf32>
    %44 = math.exp %43 : vector<2x8x8xf32>
    %cst_19 = arith.constant dense<0.000000e+00> : vector<2x8xf32>
    %45 = vector.multi_reduction <add>, %44, %cst_19 [2] : vector<2x8x8xf32> to vector<2x8xf32>
    %46 = vector.shape_cast %45 : vector<2x8xf32> to vector<2x8x1xf32>
    %47 = vector.broadcast %46 : vector<2x8x1xf32> to vector<2x8x8xf32>
    %48 = arith.divf %44, %47 : vector<2x8x8xf32>
    %49 = vector.extract_strided_slice %22 {offsets = [0, 0, 8], sizes = [2, 8, 8], strides = [1, 1, 1]} : vector<2x8x32xf32> to vector<2x8x8xf32>
    "tpu.trace_start"() <{level = 10 : i32, message = "bqk,bkd->bqd"}> : () -> ()
    %cst_20 = arith.constant dense<0.000000e+00> : vector<2x8x8xf32>
    %50 = tpu.matmul %48, %49, %cst_20 {dimension_numbers = #tpu.dot_dimension_numbers<[2], [1], [1], [2], [0, 0, 0, 1, 1, 2], [0], [0]>} : vector<2x8x8xf32>, vector<2x8x8xf32>, vector<2x8x8xf32> -> vector<2x8x8xf32>
    "tpu.trace_stop"() : () -> ()
    %51 = vector.extract_strided_slice %18 {offsets = [0, 0, 16], sizes = [2, 8, 8], strides = [1, 1, 1]} : vector<2x8x32xf32> to vector<2x8x8xf32>
    %52 = vector.extract_strided_slice %20 {offsets = [0, 0, 16], sizes = [2, 8, 8], strides = [1, 1, 1]} : vector<2x8x32xf32> to vector<2x8x8xf32>
    "tpu.trace_start"() <{level = 10 : i32, message = "bqd,bkd->bqk"}> : () -> ()
    %cst_21 = arith.constant dense<0.000000e+00> : vector<2x8x8xf32>
    %53 = tpu.matmul %51, %52, %cst_21 {dimension_numbers = #tpu.dot_dimension_numbers<[2], [2], [1], [1], [0, 0, 0, 1, 1, 1], [0], [0]>} : vector<2x8x8xf32>, vector<2x8x8xf32>, vector<2x8x8xf32> -> vector<2x8x8xf32>
    "tpu.trace_stop"() : () -> ()
    %cst_22 = arith.constant dense<0xFF800000> : vector<2x8xf32>
    %54 = vector.multi_reduction <maximumf>, %53, %cst_22 [2] : vector<2x8x8xf32> to vector<2x8xf32>
    %55 = vector.shape_cast %54 : vector<2x8xf32> to vector<2x8x1xf32>
    %56 = vector.broadcast %55 : vector<2x8x1xf32> to vector<2x8x8xf32>
    %57 = arith.subf %53, %56 : vector<2x8x8xf32>
    %58 = math.exp %57 : vector<2x8x8xf32>
    %cst_23 = arith.constant dense<0.000000e+00> : vector<2x8xf32>
    %59 = vector.multi_reduction <add>, %58, %cst_23 [2] : vector<2x8x8xf32> to vector<2x8xf32>
    %60 = vector.shape_cast %59 : vector<2x8xf32> to vector<2x8x1xf32>
    %61 = vector.broadcast %60 : vector<2x8x1xf32> to vector<2x8x8xf32>
    %62 = arith.divf %58, %61 : vector<2x8x8xf32>
    %63 = vector.extract_strided_slice %22 {offsets = [0, 0, 16], sizes = [2, 8, 8], strides = [1, 1, 1]} : vector<2x8x32xf32> to vector<2x8x8xf32>
    "tpu.trace_start"() <{level = 10 : i32, message = "bqk,bkd->bqd"}> : () -> ()
    %cst_24 = arith.constant dense<0.000000e+00> : vector<2x8x8xf32>
    %64 = tpu.matmul %62, %63, %cst_24 {dimension_numbers = #tpu.dot_dimension_numbers<[2], [1], [1], [2], [0, 0, 0, 1, 1, 2], [0], [0]>} : vector<2x8x8xf32>, vector<2x8x8xf32>, vector<2x8x8xf32> -> vector<2x8x8xf32>
    "tpu.trace_stop"() : () -> ()
    %65 = vector.extract_strided_slice %18 {offsets = [0, 0, 24], sizes = [2, 8, 8], strides = [1, 1, 1]} : vector<2x8x32xf32> to vector<2x8x8xf32>
    %66 = vector.extract_strided_slice %20 {offsets = [0, 0, 24], sizes = [2, 8, 8], strides = [1, 1, 1]} : vector<2x8x32xf32> to vector<2x8x8xf32>
    "tpu.trace_start"() <{level = 10 : i32, message = "bqd,bkd->bqk"}> : () -> ()
    %cst_25 = arith.constant dense<0.000000e+00> : vector<2x8x8xf32>
    %67 = tpu.matmul %65, %66, %cst_25 {dimension_numbers = #tpu.dot_dimension_numbers<[2], [2], [1], [1], [0, 0, 0, 1, 1, 1], [0], [0]>} : vector<2x8x8xf32>, vector<2x8x8xf32>, vector<2x8x8xf32> -> vector<2x8x8xf32>
    "tpu.trace_stop"() : () -> ()
    %cst_26 = arith.constant dense<0xFF800000> : vector<2x8xf32>
    %68 = vector.multi_reduction <maximumf>, %67, %cst_26 [2] : vector<2x8x8xf32> to vector<2x8xf32>
    %69 = vector.shape_cast %68 : vector<2x8xf32> to vector<2x8x1xf32>
    %70 = vector.broadcast %69 : vector<2x8x1xf32> to vector<2x8x8xf32>
    %71 = arith.subf %67, %70 : vector<2x8x8xf32>
    %72 = math.exp %71 : vector<2x8x8xf32>
    %cst_27 = arith.constant dense<0.000000e+00> : vector<2x8xf32>
    %73 = vector.multi_reduction <add>, %72, %cst_27 [2] : vector<2x8x8xf32> to vector<2x8xf32>
    %74 = vector.shape_cast %73 : vector<2x8xf32> to vector<2x8x1xf32>
    %75 = vector.broadcast %74 : vector<2x8x1xf32> to vector<2x8x8xf32>
    %76 = arith.divf %72, %75 : vector<2x8x8xf32>
    %77 = vector.extract_strided_slice %22 {offsets = [0, 0, 24], sizes = [2, 8, 8], strides = [1, 1, 1]} : vector<2x8x32xf32> to vector<2x8x8xf32>
    "tpu.trace_start"() <{level = 10 : i32, message = "bqk,bkd->bqd"}> : () -> ()
    %cst_28 = arith.constant dense<0.000000e+00> : vector<2x8x8xf32>
    %78 = tpu.matmul %76, %77, %cst_28 {dimension_numbers = #tpu.dot_dimension_numbers<[2], [1], [1], [2], [0, 0, 0, 1, 1, 2], [0], [0]>} : vector<2x8x8xf32>, vector<2x8x8xf32>, vector<2x8x8xf32> -> vector<2x8x8xf32>
    "tpu.trace_stop"() : () -> ()
    %79 = tpu.concatenate %36, %50, %64, %78 in 2 : vector<2x8x8xf32>, vector<2x8x8xf32>, vector<2x8x8xf32>, vector<2x8x8xf32> -> vector<2x8x32xf32>
    %80 = vector.shape_cast %79 : vector<2x8x32xf32> to vector<16x32xf32>
    %c0_29 = arith.constant 0 : index
    %c0_30 = arith.constant 0 : index
    %c0_31 = arith.constant 0 : index
    %81 = vector.load %arg5[%c0_29, %c0_30, %c0_31] : memref<2x32x32xf32, #tpu.memory_space<vmem>>, vector<1x32x32xf32>
    %82 = vector.shape_cast %81 : vector<1x32x32xf32> to vector<32x32xf32>
    %cst_32 = arith.constant dense<0.000000e+00> : vector<16x32xf32>
    %83 = tpu.matmul %80, %82, %cst_32 {dimension_numbers = #tpu.dot_dimension_numbers<[1], [0], [0], [1], [0, 0, 1, 1], [], []>} : vector<16x32xf32>, vector<32x32xf32>, vector<16x32xf32> -> vector<16x32xf32>
    %c0_33 = arith.constant 0 : index
    %c0_34 = arith.constant 0 : index
    %c0_35 = arith.constant 0 : index
    %84 = vector.load %arg6[%c0_33, %c0_34, %c0_35] : memref<2x1x32xf32, #tpu.memory_space<vmem>>, vector<1x1x32xf32>
    %85 = vector.shape_cast %84 : vector<1x1x32xf32> to vector<1x32xf32>
    %86 = vector.broadcast %85 : vector<1x32xf32> to vector<16x32xf32>
    %87 = arith.addf %83, %86 : vector<16x32xf32>
    %88 = arith.addf %9, %87 : vector<16x32xf32>
    %c0_36 = arith.constant 0 : index
    %c0_37 = arith.constant 0 : index
    %c0_38 = arith.constant 0 : index
    %89 = vector.load %arg7[%c0_36, %c0_37, %c0_38] : memref<2x1x32xf32, #tpu.memory_space<vmem>>, vector<1x1x32xf32>
    %90 = vector.shape_cast %89 : vector<1x1x32xf32> to vector<1x32xf32>
    %c0_39 = arith.constant 0 : index
    %c0_40 = arith.constant 0 : index
    %c0_41 = arith.constant 0 : index
    %91 = vector.load %arg8[%c0_39, %c0_40, %c0_41] : memref<2x1x32xf32, #tpu.memory_space<vmem>>, vector<1x1x32xf32>
    %92 = vector.shape_cast %91 : vector<1x1x32xf32> to vector<1x32xf32>
    %cst_42 = arith.constant dense<0.000000e+00> : vector<16xf32>
    %93 = vector.multi_reduction <add>, %88, %cst_42 [1] : vector<16x32xf32> to vector<16xf32>
    %94 = vector.shape_cast %93 : vector<16xf32> to vector<16x1xf32>
    %cst_43 = arith.constant 3.200000e+01 : f32
    %95 = vector.broadcast %cst_43 : f32 to vector<16x1xf32>
    %96 = arith.divf %94, %95 : vector<16x1xf32>
    %97 = vector.broadcast %96 : vector<16x1xf32> to vector<16x32xf32>
    %98 = arith.subf %88, %97 : vector<16x32xf32>
    %99 = arith.mulf %98, %98 : vector<16x32xf32>
    %cst_44 = arith.constant dense<0.000000e+00> : vector<16xf32>
    %100 = vector.multi_reduction <add>, %99, %cst_44 [1] : vector<16x32xf32> to vector<16xf32>
    %101 = vector.shape_cast %100 : vector<16xf32> to vector<16x1xf32>
    %cst_45 = arith.constant 3.200000e+01 : f32
    %102 = vector.broadcast %cst_45 : f32 to vector<16x1xf32>
    %103 = arith.divf %101, %102 : vector<16x1xf32>
    %cst_46 = arith.constant 9.99999974E-6 : f32
    %104 = vector.broadcast %cst_46 : f32 to vector<16x1xf32>
    %105 = arith.addf %103, %104 : vector<16x1xf32>
    %106 = math.rsqrt %105 : vector<16x1xf32>
    %107 = vector.broadcast %106 : vector<16x1xf32> to vector<16x32xf32>
    %108 = arith.mulf %98, %107 : vector<16x32xf32>
    %109 = vector.broadcast %90 : vector<1x32xf32> to vector<16x32xf32>
    %110 = arith.mulf %108, %109 : vector<16x32xf32>
    %111 = vector.broadcast %92 : vector<1x32xf32> to vector<16x32xf32>
    %112 = arith.addf %110, %111 : vector<16x32xf32>
    %c0_47 = arith.constant 0 : index
    %c0_48 = arith.constant 0 : index
    %c0_49 = arith.constant 0 : index
    %113 = vector.load %arg9[%c0_47, %c0_48, %c0_49] : memref<2x32x64xf32, #tpu.memory_space<vmem>>, vector<1x32x64xf32>
    %114 = vector.shape_cast %113 : vector<1x32x64xf32> to vector<32x64xf32>
    %cst_50 = arith.constant dense<0.000000e+00> : vector<16x64xf32>
    %115 = tpu.matmul %112, %114, %cst_50 {dimension_numbers = #tpu.dot_dimension_numbers<[1], [0], [0], [1], [0, 0, 1, 1], [], []>} : vector<16x32xf32>, vector<32x64xf32>, vector<16x64xf32> -> vector<16x64xf32>
    %c0_51 = arith.constant 0 : index
    %c0_52 = arith.constant 0 : index
    %c0_53 = arith.constant 0 : index
    %116 = vector.load %arg10[%c0_51, %c0_52, %c0_53] : memref<2x1x64xf32, #tpu.memory_space<vmem>>, vector<1x1x64xf32>
    %117 = vector.shape_cast %116 : vector<1x1x64xf32> to vector<1x64xf32>
    %118 = vector.broadcast %117 : vector<1x64xf32> to vector<16x64xf32>
    %119 = arith.addf %115, %118 : vector<16x64xf32>
    %cst_54 = arith.constant 5.000000e-01 : f32
    %120 = vector.broadcast %cst_54 : f32 to vector<16x64xf32>
    %121 = arith.mulf %120, %119 : vector<16x64xf32>
    %cst_55 = arith.constant 0.707106769 : f32
    %122 = vector.broadcast %cst_55 : f32 to vector<16x64xf32>
    %123 = arith.mulf %119, %122 : vector<16x64xf32>
    %cst_56 = arith.constant -4.000000e+00 : f32
    %cst_57 = arith.constant 4.000000e+00 : f32
    %124 = vector.broadcast %cst_56 : f32 to vector<16x64xf32>
    %125 = arith.maximumf %124, %123 : vector<16x64xf32>
    %126 = vector.broadcast %cst_57 : f32 to vector<16x64xf32>
    %127 = arith.minimumf %126, %125 : vector<16x64xf32>
    %128 = arith.mulf %127, %127 : vector<16x64xf32>
    %cst_58 = arith.constant 2.29050653E-4 : f32
    %129 = vector.broadcast %cst_58 : f32 to vector<16x64xf32>
    %130 = arith.mulf %129, %128 : vector<16x64xf32>
    %cst_59 = arith.constant 0.00340829091 : f32
    %131 = vector.broadcast %cst_59 : f32 to vector<16x64xf32>
    %132 = arith.addf %130, %131 : vector<16x64xf32>
    %133 = arith.mulf %132, %128 : vector<16x64xf32>
    %cst_60 = arith.constant 0.0509556942 : f32
    %134 = vector.broadcast %cst_60 : f32 to vector<16x64xf32>
    %135 = arith.addf %133, %134 : vector<16x64xf32>
    %136 = arith.mulf %135, %128 : vector<16x64xf32>
    %cst_61 = arith.constant 0.185208321 : f32
    %137 = vector.broadcast %cst_61 : f32 to vector<16x64xf32>
    %138 = arith.addf %136, %137 : vector<16x64xf32>
    %139 = arith.mulf %138, %128 : vector<16x64xf32>
    %cst_62 = arith.constant 1.12837911 : f32
    %140 = vector.broadcast %cst_62 : f32 to vector<16x64xf32>
    %141 = arith.addf %139, %140 : vector<16x64xf32>
    %cst_63 = arith.constant -1.17916031E-7 : f32
    %142 = vector.broadcast %cst_63 : f32 to vector<16x64xf32>
    %143 = arith.mulf %142, %128 : vector<16x64xf32>
    %cst_64 = arith.constant 2.35479656E-5 : f32
    %144 = vector.broadcast %cst_64 : f32 to vector<16x64xf32>
    %145 = arith.addf %143, %144 : vector<16x64xf32>
    %146 = arith.mulf %145, %128 : vector<16x64xf32>
    %cst_65 = arith.constant 0.00101796258 : f32
    %147 = vector.broadcast %cst_65 : f32 to vector<16x64xf32>
    %148 = arith.addf %146, %147 : vector<16x64xf32>
    %149 = arith.mulf %148, %128 : vector<16x64xf32>
    %cst_66 = arith.constant 0.0140704699 : f32
    %150 = vector.broadcast %cst_66 : f32 to vector<16x64xf32>
    %151 = arith.addf %149, %150 : vector<16x64xf32>
    %152 = arith.mulf %151, %128 : vector<16x64xf32>
    %cst_67 = arith.constant 0.110985048 : f32
    %153 = vector.broadcast %cst_67 : f32 to vector<16x64xf32>
    %154 = arith.addf %152, %153 : vector<16x64xf32>
    %155 = arith.mulf %154, %128 : vector<16x64xf32>
    %cst_68 = arith.constant 0.497469246 : f32
    %156 = vector.broadcast %cst_68 : f32 to vector<16x64xf32>
    %157 = arith.addf %155, %156 : vector<16x64xf32>
    %158 = arith.mulf %157, %128 : vector<16x64xf32>
    %cst_69 = arith.constant 1.000000e+00 : f32
    %159 = vector.broadcast %cst_69 : f32 to vector<16x64xf32>
    %160 = arith.addf %158, %159 : vector<16x64xf32>
    %161 = arith.mulf %127, %141 : vector<16x64xf32>
    %162 = arith.divf %161, %160 : vector<16x64xf32>
    %cst_70 = arith.constant 1.000000e+00 : f32
    %163 = vector.broadcast %cst_70 : f32 to vector<16x64xf32>
    %164 = arith.addf %163, %162 : vector<16x64xf32>
    %165 = arith.mulf %121, %164 : vector<16x64xf32>
    %c0_71 = arith.constant 0 : index
    %c0_72 = arith.constant 0 : index
    %c0_73 = arith.constant 0 : index
    %166 = vector.load %arg11[%c0_71, %c0_72, %c0_73] : memref<2x64x32xf32, #tpu.memory_space<vmem>>, vector<1x64x32xf32>
    %167 = vector.shape_cast %166 : vector<1x64x32xf32> to vector<64x32xf32>
    %cst_74 = arith.constant dense<0.000000e+00> : vector<16x32xf32>
    %168 = tpu.matmul %165, %167, %cst_74 {dimension_numbers = #tpu.dot_dimension_numbers<[1], [0], [0], [1], [0, 0, 1, 1], [], []>} : vector<16x64xf32>, vector<64x32xf32>, vector<16x32xf32> -> vector<16x32xf32>
    %c0_75 = arith.constant 0 : index
    %c0_76 = arith.constant 0 : index
    %c0_77 = arith.constant 0 : index
    %169 = vector.load %arg12[%c0_75, %c0_76, %c0_77] : memref<2x1x32xf32, #tpu.memory_space<vmem>>, vector<1x1x32xf32>
    %170 = vector.shape_cast %169 : vector<1x1x32xf32> to vector<1x32xf32>
    %171 = vector.broadcast %170 : vector<1x32xf32> to vector<16x32xf32>
    %172 = arith.addf %168, %171 : vector<16x32xf32>
    %173 = arith.addf %112, %172 : vector<16x32xf32>
    %c0_78 = arith.constant 0 : index
    %c0_79 = arith.constant 0 : index
    %c0_80 = arith.constant 0 : index
    %174 = vector.load %arg13[%c0_78, %c0_79, %c0_80] : memref<2x1x32xf32, #tpu.memory_space<vmem>>, vector<1x1x32xf32>
    %175 = vector.shape_cast %174 : vector<1x1x32xf32> to vector<1x32xf32>
    %c0_81 = arith.constant 0 : index
    %c0_82 = arith.constant 0 : index
    %c0_83 = arith.constant 0 : index
    %176 = vector.load %arg14[%c0_81, %c0_82, %c0_83] : memref<2x1x32xf32, #tpu.memory_space<vmem>>, vector<1x1x32xf32>
    %177 = vector.shape_cast %176 : vector<1x1x32xf32> to vector<1x32xf32>
    %cst_84 = arith.constant dense<0.000000e+00> : vector<16xf32>
    %178 = vector.multi_reduction <add>, %173, %cst_84 [1] : vector<16x32xf32> to vector<16xf32>
    %179 = vector.shape_cast %178 : vector<16xf32> to vector<16x1xf32>
    %cst_85 = arith.constant 3.200000e+01 : f32
    %180 = vector.broadcast %cst_85 : f32 to vector<16x1xf32>
    %181 = arith.divf %179, %180 : vector<16x1xf32>
    %182 = vector.broadcast %181 : vector<16x1xf32> to vector<16x32xf32>
    %183 = arith.subf %173, %182 : vector<16x32xf32>
    %184 = arith.mulf %183, %183 : vector<16x32xf32>
    %cst_86 = arith.constant dense<0.000000e+00> : vector<16xf32>
    %185 = vector.multi_reduction <add>, %184, %cst_86 [1] : vector<16x32xf32> to vector<16xf32>
    %186 = vector.shape_cast %185 : vector<16xf32> to vector<16x1xf32>
    %cst_87 = arith.constant 3.200000e+01 : f32
    %187 = vector.broadcast %cst_87 : f32 to vector<16x1xf32>
    %188 = arith.divf %186, %187 : vector<16x1xf32>
    %cst_88 = arith.constant 9.99999974E-6 : f32
    %189 = vector.broadcast %cst_88 : f32 to vector<16x1xf32>
    %190 = arith.addf %188, %189 : vector<16x1xf32>
    %191 = math.rsqrt %190 : vector<16x1xf32>
    %192 = vector.broadcast %191 : vector<16x1xf32> to vector<16x32xf32>
    %193 = arith.mulf %183, %192 : vector<16x32xf32>
    %194 = vector.broadcast %175 : vector<1x32xf32> to vector<16x32xf32>
    %195 = arith.mulf %193, %194 : vector<16x32xf32>
    %196 = vector.broadcast %177 : vector<1x32xf32> to vector<16x32xf32>
    %197 = arith.addf %195, %196 : vector<16x32xf32>
    %c1 = arith.constant 1 : index
    %c0_89 = arith.constant 0 : index
    %c0_90 = arith.constant 0 : index
    %198 = vector.load %arg3[%c1, %c0_89, %c0_90] : memref<2x32x96xf32, #tpu.memory_space<vmem>>, vector<1x32x96xf32>
    %199 = vector.shape_cast %198 : vector<1x32x96xf32> to vector<32x96xf32>
    %cst_91 = arith.constant dense<0.000000e+00> : vector<16x96xf32>
    %200 = tpu.matmul %197, %199, %cst_91 {dimension_numbers = #tpu.dot_dimension_numbers<[1], [0], [0], [1], [0, 0, 1, 1], [], []>} : vector<16x32xf32>, vector<32x96xf32>, vector<16x96xf32> -> vector<16x96xf32>
    %c1_92 = arith.constant 1 : index
    %c0_93 = arith.constant 0 : index
    %c0_94 = arith.constant 0 : index
    %201 = vector.load %arg4[%c1_92, %c0_93, %c0_94] : memref<2x1x96xf32, #tpu.memory_space<vmem>>, vector<1x1x96xf32>
    %202 = vector.shape_cast %201 : vector<1x1x96xf32> to vector<1x96xf32>
    %203 = vector.broadcast %202 : vector<1x96xf32> to vector<16x96xf32>
    %204 = arith.addf %200, %203 : vector<16x96xf32>
    %205 = vector.extract_strided_slice %204 {offsets = [0, 0], sizes = [16, 32], strides = [1, 1]} : vector<16x96xf32> to vector<16x32xf32>
    %206 = vector.shape_cast %205 : vector<16x32xf32> to vector<2x8x32xf32>
    %207 = vector.extract_strided_slice %204 {offsets = [0, 32], sizes = [16, 32], strides = [1, 1]} : vector<16x96xf32> to vector<16x32xf32>
    %208 = vector.shape_cast %207 : vector<16x32xf32> to vector<2x8x32xf32>
    %209 = vector.extract_strided_slice %204 {offsets = [0, 64], sizes = [16, 32], strides = [1, 1]} : vector<16x96xf32> to vector<16x32xf32>
    %210 = vector.shape_cast %209 : vector<16x32xf32> to vector<2x8x32xf32>
    %211 = vector.extract_strided_slice %206 {offsets = [0, 0, 0], sizes = [2, 8, 8], strides = [1, 1, 1]} : vector<2x8x32xf32> to vector<2x8x8xf32>
    %212 = vector.extract_strided_slice %208 {offsets = [0, 0, 0], sizes = [2, 8, 8], strides = [1, 1, 1]} : vector<2x8x32xf32> to vector<2x8x8xf32>
    "tpu.trace_start"() <{level = 10 : i32, message = "bqd,bkd->bqk"}> : () -> ()
    %cst_95 = arith.constant dense<0.000000e+00> : vector<2x8x8xf32>
    %213 = tpu.matmul %211, %212, %cst_95 {dimension_numbers = #tpu.dot_dimension_numbers<[2], [2], [1], [1], [0, 0, 0, 1, 1, 1], [0], [0]>} : vector<2x8x8xf32>, vector<2x8x8xf32>, vector<2x8x8xf32> -> vector<2x8x8xf32>
    "tpu.trace_stop"() : () -> ()
    %cst_96 = arith.constant dense<0xFF800000> : vector<2x8xf32>
    %214 = vector.multi_reduction <maximumf>, %213, %cst_96 [2] : vector<2x8x8xf32> to vector<2x8xf32>
    %215 = vector.shape_cast %214 : vector<2x8xf32> to vector<2x8x1xf32>
    %216 = vector.broadcast %215 : vector<2x8x1xf32> to vector<2x8x8xf32>
    %217 = arith.subf %213, %216 : vector<2x8x8xf32>
    %218 = math.exp %217 : vector<2x8x8xf32>
    %cst_97 = arith.constant dense<0.000000e+00> : vector<2x8xf32>
    %219 = vector.multi_reduction <add>, %218, %cst_97 [2] : vector<2x8x8xf32> to vector<2x8xf32>
    %220 = vector.shape_cast %219 : vector<2x8xf32> to vector<2x8x1xf32>
    %221 = vector.broadcast %220 : vector<2x8x1xf32> to vector<2x8x8xf32>
    %222 = arith.divf %218, %221 : vector<2x8x8xf32>
    %223 = vector.extract_strided_slice %210 {offsets = [0, 0, 0], sizes = [2, 8, 8], strides = [1, 1, 1]} : vector<2x8x32xf32> to vector<2x8x8xf32>
    "tpu.trace_start"() <{level = 10 : i32, message = "bqk,bkd->bqd"}> : () -> ()
    %cst_98 = arith.constant dense<0.000000e+00> : vector<2x8x8xf32>
    %224 = tpu.matmul %222, %223, %cst_98 {dimension_numbers = #tpu.dot_dimension_numbers<[2], [1], [1], [2], [0, 0, 0, 1, 1, 2], [0], [0]>} : vector<2x8x8xf32>, vector<2x8x8xf32>, vector<2x8x8xf32> -> vector<2x8x8xf32>
    "tpu.trace_stop"() : () -> ()
    %225 = vector.extract_strided_slice %206 {offsets = [0, 0, 8], sizes = [2, 8, 8], strides = [1, 1, 1]} : vector<2x8x32xf32> to vector<2x8x8xf32>
    %226 = vector.extract_strided_slice %208 {offsets = [0, 0, 8], sizes = [2, 8, 8], strides = [1, 1, 1]} : vector<2x8x32xf32> to vector<2x8x8xf32>
    "tpu.trace_start"() <{level = 10 : i32, message = "bqd,bkd->bqk"}> : () -> ()
    %cst_99 = arith.constant dense<0.000000e+00> : vector<2x8x8xf32>
    %227 = tpu.matmul %225, %226, %cst_99 {dimension_numbers = #tpu.dot_dimension_numbers<[2], [2], [1], [1], [0, 0, 0, 1, 1, 1], [0], [0]>} : vector<2x8x8xf32>, vector<2x8x8xf32>, vector<2x8x8xf32> -> vector<2x8x8xf32>
    "tpu.trace_stop"() : () -> ()
    %cst_100 = arith.constant dense<0xFF800000> : vector<2x8xf32>
    %228 = vector.multi_reduction <maximumf>, %227, %cst_100 [2] : vector<2x8x8xf32> to vector<2x8xf32>
    %229 = vector.shape_cast %228 : vector<2x8xf32> to vector<2x8x1xf32>
    %230 = vector.broadcast %229 : vector<2x8x1xf32> to vector<2x8x8xf32>
    %231 = arith.subf %227, %230 : vector<2x8x8xf32>
    %232 = math.exp %231 : vector<2x8x8xf32>
    %cst_101 = arith.constant dense<0.000000e+00> : vector<2x8xf32>
    %233 = vector.multi_reduction <add>, %232, %cst_101 [2] : vector<2x8x8xf32> to vector<2x8xf32>
    %234 = vector.shape_cast %233 : vector<2x8xf32> to vector<2x8x1xf32>
    %235 = vector.broadcast %234 : vector<2x8x1xf32> to vector<2x8x8xf32>
    %236 = arith.divf %232, %235 : vector<2x8x8xf32>
    %237 = vector.extract_strided_slice %210 {offsets = [0, 0, 8], sizes = [2, 8, 8], strides = [1, 1, 1]} : vector<2x8x32xf32> to vector<2x8x8xf32>
    "tpu.trace_start"() <{level = 10 : i32, message = "bqk,bkd->bqd"}> : () -> ()
    %cst_102 = arith.constant dense<0.000000e+00> : vector<2x8x8xf32>
    %238 = tpu.matmul %236, %237, %cst_102 {dimension_numbers = #tpu.dot_dimension_numbers<[2], [1], [1], [2], [0, 0, 0, 1, 1, 2], [0], [0]>} : vector<2x8x8xf32>, vector<2x8x8xf32>, vector<2x8x8xf32> -> vector<2x8x8xf32>
    "tpu.trace_stop"() : () -> ()
    %239 = vector.extract_strided_slice %206 {offsets = [0, 0, 16], sizes = [2, 8, 8], strides = [1, 1, 1]} : vector<2x8x32xf32> to vector<2x8x8xf32>
    %240 = vector.extract_strided_slice %208 {offsets = [0, 0, 16], sizes = [2, 8, 8], strides = [1, 1, 1]} : vector<2x8x32xf32> to vector<2x8x8xf32>
    "tpu.trace_start"() <{level = 10 : i32, message = "bqd,bkd->bqk"}> : () -> ()
    %cst_103 = arith.constant dense<0.000000e+00> : vector<2x8x8xf32>
    %241 = tpu.matmul %239, %240, %cst_103 {dimension_numbers = #tpu.dot_dimension_numbers<[2], [2], [1], [1], [0, 0, 0, 1, 1, 1], [0], [0]>} : vector<2x8x8xf32>, vector<2x8x8xf32>, vector<2x8x8xf32> -> vector<2x8x8xf32>
    "tpu.trace_stop"() : () -> ()
    %cst_104 = arith.constant dense<0xFF800000> : vector<2x8xf32>
    %242 = vector.multi_reduction <maximumf>, %241, %cst_104 [2] : vector<2x8x8xf32> to vector<2x8xf32>
    %243 = vector.shape_cast %242 : vector<2x8xf32> to vector<2x8x1xf32>
    %244 = vector.broadcast %243 : vector<2x8x1xf32> to vector<2x8x8xf32>
    %245 = arith.subf %241, %244 : vector<2x8x8xf32>
    %246 = math.exp %245 : vector<2x8x8xf32>
    %cst_105 = arith.constant dense<0.000000e+00> : vector<2x8xf32>
    %247 = vector.multi_reduction <add>, %246, %cst_105 [2] : vector<2x8x8xf32> to vector<2x8xf32>
    %248 = vector.shape_cast %247 : vector<2x8xf32> to vector<2x8x1xf32>
    %249 = vector.broadcast %248 : vector<2x8x1xf32> to vector<2x8x8xf32>
    %250 = arith.divf %246, %249 : vector<2x8x8xf32>
    %251 = vector.extract_strided_slice %210 {offsets = [0, 0, 16], sizes = [2, 8, 8], strides = [1, 1, 1]} : vector<2x8x32xf32> to vector<2x8x8xf32>
    "tpu.trace_start"() <{level = 10 : i32, message = "bqk,bkd->bqd"}> : () -> ()
    %cst_106 = arith.constant dense<0.000000e+00> : vector<2x8x8xf32>
    %252 = tpu.matmul %250, %251, %cst_106 {dimension_numbers = #tpu.dot_dimension_numbers<[2], [1], [1], [2], [0, 0, 0, 1, 1, 2], [0], [0]>} : vector<2x8x8xf32>, vector<2x8x8xf32>, vector<2x8x8xf32> -> vector<2x8x8xf32>
    "tpu.trace_stop"() : () -> ()
    %253 = vector.extract_strided_slice %206 {offsets = [0, 0, 24], sizes = [2, 8, 8], strides = [1, 1, 1]} : vector<2x8x32xf32> to vector<2x8x8xf32>
    %254 = vector.extract_strided_slice %208 {offsets = [0, 0, 24], sizes = [2, 8, 8], strides = [1, 1, 1]} : vector<2x8x32xf32> to vector<2x8x8xf32>
    "tpu.trace_start"() <{level = 10 : i32, message = "bqd,bkd->bqk"}> : () -> ()
    %cst_107 = arith.constant dense<0.000000e+00> : vector<2x8x8xf32>
    %255 = tpu.matmul %253, %254, %cst_107 {dimension_numbers = #tpu.dot_dimension_numbers<[2], [2], [1], [1], [0, 0, 0, 1, 1, 1], [0], [0]>} : vector<2x8x8xf32>, vector<2x8x8xf32>, vector<2x8x8xf32> -> vector<2x8x8xf32>
    "tpu.trace_stop"() : () -> ()
    %cst_108 = arith.constant dense<0xFF800000> : vector<2x8xf32>
    %256 = vector.multi_reduction <maximumf>, %255, %cst_108 [2] : vector<2x8x8xf32> to vector<2x8xf32>
    %257 = vector.shape_cast %256 : vector<2x8xf32> to vector<2x8x1xf32>
    %258 = vector.broadcast %257 : vector<2x8x1xf32> to vector<2x8x8xf32>
    %259 = arith.subf %255, %258 : vector<2x8x8xf32>
    %260 = math.exp %259 : vector<2x8x8xf32>
    %cst_109 = arith.constant dense<0.000000e+00> : vector<2x8xf32>
    %261 = vector.multi_reduction <add>, %260, %cst_109 [2] : vector<2x8x8xf32> to vector<2x8xf32>
    %262 = vector.shape_cast %261 : vector<2x8xf32> to vector<2x8x1xf32>
    %263 = vector.broadcast %262 : vector<2x8x1xf32> to vector<2x8x8xf32>
    %264 = arith.divf %260, %263 : vector<2x8x8xf32>
    %265 = vector.extract_strided_slice %210 {offsets = [0, 0, 24], sizes = [2, 8, 8], strides = [1, 1, 1]} : vector<2x8x32xf32> to vector<2x8x8xf32>
    "tpu.trace_start"() <{level = 10 : i32, message = "bqk,bkd->bqd"}> : () -> ()
    %cst_110 = arith.constant dense<0.000000e+00> : vector<2x8x8xf32>
    %266 = tpu.matmul %264, %265, %cst_110 {dimension_numbers = #tpu.dot_dimension_numbers<[2], [1], [1], [2], [0, 0, 0, 1, 1, 2], [0], [0]>} : vector<2x8x8xf32>, vector<2x8x8xf32>, vector<2x8x8xf32> -> vector<2x8x8xf32>
    "tpu.trace_stop"() : () -> ()
    %267 = tpu.concatenate %224, %238, %252, %266 in 2 : vector<2x8x8xf32>, vector<2x8x8xf32>, vector<2x8x8xf32>, vector<2x8x8xf32> -> vector<2x8x32xf32>
    %268 = vector.shape_cast %267 : vector<2x8x32xf32> to vector<16x32xf32>
    %c1_111 = arith.constant 1 : index
    %c0_112 = arith.constant 0 : index
    %c0_113 = arith.constant 0 : index
    %269 = vector.load %arg5[%c1_111, %c0_112, %c0_113] : memref<2x32x32xf32, #tpu.memory_space<vmem>>, vector<1x32x32xf32>
    %270 = vector.shape_cast %269 : vector<1x32x32xf32> to vector<32x32xf32>
    %cst_114 = arith.constant dense<0.000000e+00> : vector<16x32xf32>
    %271 = tpu.matmul %268, %270, %cst_114 {dimension_numbers = #tpu.dot_dimension_numbers<[1], [0], [0], [1], [0, 0, 1, 1], [], []>} : vector<16x32xf32>, vector<32x32xf32>, vector<16x32xf32> -> vector<16x32xf32>
    %c1_115 = arith.constant 1 : index
    %c0_116 = arith.constant 0 : index
    %c0_117 = arith.constant 0 : index
    %272 = vector.load %arg6[%c1_115, %c0_116, %c0_117] : memref<2x1x32xf32, #tpu.memory_space<vmem>>, vector<1x1x32xf32>
    %273 = vector.shape_cast %272 : vector<1x1x32xf32> to vector<1x32xf32>
    %274 = vector.broadcast %273 : vector<1x32xf32> to vector<16x32xf32>
    %275 = arith.addf %271, %274 : vector<16x32xf32>
    %276 = arith.addf %197, %275 : vector<16x32xf32>
    %c1_118 = arith.constant 1 : index
    %c0_119 = arith.constant 0 : index
    %c0_120 = arith.constant 0 : index
    %277 = vector.load %arg7[%c1_118, %c0_119, %c0_120] : memref<2x1x32xf32, #tpu.memory_space<vmem>>, vector<1x1x32xf32>
    %278 = vector.shape_cast %277 : vector<1x1x32xf32> to vector<1x32xf32>
    %c1_121 = arith.constant 1 : index
    %c0_122 = arith.constant 0 : index
    %c0_123 = arith.constant 0 : index
    %279 = vector.load %arg8[%c1_121, %c0_122, %c0_123] : memref<2x1x32xf32, #tpu.memory_space<vmem>>, vector<1x1x32xf32>
    %280 = vector.shape_cast %279 : vector<1x1x32xf32> to vector<1x32xf32>
    %cst_124 = arith.constant dense<0.000000e+00> : vector<16xf32>
    %281 = vector.multi_reduction <add>, %276, %cst_124 [1] : vector<16x32xf32> to vector<16xf32>
    %282 = vector.shape_cast %281 : vector<16xf32> to vector<16x1xf32>
    %cst_125 = arith.constant 3.200000e+01 : f32
    %283 = vector.broadcast %cst_125 : f32 to vector<16x1xf32>
    %284 = arith.divf %282, %283 : vector<16x1xf32>
    %285 = vector.broadcast %284 : vector<16x1xf32> to vector<16x32xf32>
    %286 = arith.subf %276, %285 : vector<16x32xf32>
    %287 = arith.mulf %286, %286 : vector<16x32xf32>
    %cst_126 = arith.constant dense<0.000000e+00> : vector<16xf32>
    %288 = vector.multi_reduction <add>, %287, %cst_126 [1] : vector<16x32xf32> to vector<16xf32>
    %289 = vector.shape_cast %288 : vector<16xf32> to vector<16x1xf32>
    %cst_127 = arith.constant 3.200000e+01 : f32
    %290 = vector.broadcast %cst_127 : f32 to vector<16x1xf32>
    %291 = arith.divf %289, %290 : vector<16x1xf32>
    %cst_128 = arith.constant 9.99999974E-6 : f32
    %292 = vector.broadcast %cst_128 : f32 to vector<16x1xf32>
    %293 = arith.addf %291, %292 : vector<16x1xf32>
    %294 = math.rsqrt %293 : vector<16x1xf32>
    %295 = vector.broadcast %294 : vector<16x1xf32> to vector<16x32xf32>
    %296 = arith.mulf %286, %295 : vector<16x32xf32>
    %297 = vector.broadcast %278 : vector<1x32xf32> to vector<16x32xf32>
    %298 = arith.mulf %296, %297 : vector<16x32xf32>
    %299 = vector.broadcast %280 : vector<1x32xf32> to vector<16x32xf32>
    %300 = arith.addf %298, %299 : vector<16x32xf32>
    %c1_129 = arith.constant 1 : index
    %c0_130 = arith.constant 0 : index
    %c0_131 = arith.constant 0 : index
    %301 = vector.load %arg9[%c1_129, %c0_130, %c0_131] : memref<2x32x64xf32, #tpu.memory_space<vmem>>, vector<1x32x64xf32>
    %302 = vector.shape_cast %301 : vector<1x32x64xf32> to vector<32x64xf32>
    %cst_132 = arith.constant dense<0.000000e+00> : vector<16x64xf32>
    %303 = tpu.matmul %300, %302, %cst_132 {dimension_numbers = #tpu.dot_dimension_numbers<[1], [0], [0], [1], [0, 0, 1, 1], [], []>} : vector<16x32xf32>, vector<32x64xf32>, vector<16x64xf32> -> vector<16x64xf32>
    %c1_133 = arith.constant 1 : index
    %c0_134 = arith.constant 0 : index
    %c0_135 = arith.constant 0 : index
    %304 = vector.load %arg10[%c1_133, %c0_134, %c0_135] : memref<2x1x64xf32, #tpu.memory_space<vmem>>, vector<1x1x64xf32>
    %305 = vector.shape_cast %304 : vector<1x1x64xf32> to vector<1x64xf32>
    %306 = vector.broadcast %305 : vector<1x64xf32> to vector<16x64xf32>
    %307 = arith.addf %303, %306 : vector<16x64xf32>
    %cst_136 = arith.constant 5.000000e-01 : f32
    %308 = vector.broadcast %cst_136 : f32 to vector<16x64xf32>
    %309 = arith.mulf %308, %307 : vector<16x64xf32>
    %cst_137 = arith.constant 0.707106769 : f32
    %310 = vector.broadcast %cst_137 : f32 to vector<16x64xf32>
    %311 = arith.mulf %307, %310 : vector<16x64xf32>
    %cst_138 = arith.constant -4.000000e+00 : f32
    %cst_139 = arith.constant 4.000000e+00 : f32
    %312 = vector.broadcast %cst_138 : f32 to vector<16x64xf32>
    %313 = arith.maximumf %312, %311 : vector<16x64xf32>
    %314 = vector.broadcast %cst_139 : f32 to vector<16x64xf32>
    %315 = arith.minimumf %314, %313 : vector<16x64xf32>
    %316 = arith.mulf %315, %315 : vector<16x64xf32>
    %cst_140 = arith.constant 2.29050653E-4 : f32
    %317 = vector.broadcast %cst_140 : f32 to vector<16x64xf32>
    %318 = arith.mulf %317, %316 : vector<16x64xf32>
    %cst_141 = arith.constant 0.00340829091 : f32
    %319 = vector.broadcast %cst_141 : f32 to vector<16x64xf32>
    %320 = arith.addf %318, %319 : vector<16x64xf32>
    %321 = arith.mulf %320, %316 : vector<16x64xf32>
    %cst_142 = arith.constant 0.0509556942 : f32
    %322 = vector.broadcast %cst_142 : f32 to vector<16x64xf32>
    %323 = arith.addf %321, %322 : vector<16x64xf32>
    %324 = arith.mulf %323, %316 : vector<16x64xf32>
    %cst_143 = arith.constant 0.185208321 : f32
    %325 = vector.broadcast %cst_143 : f32 to vector<16x64xf32>
    %326 = arith.addf %324, %325 : vector<16x64xf32>
    %327 = arith.mulf %326, %316 : vector<16x64xf32>
    %cst_144 = arith.constant 1.12837911 : f32
    %328 = vector.broadcast %cst_144 : f32 to vector<16x64xf32>
    %329 = arith.addf %327, %328 : vector<16x64xf32>
    %cst_145 = arith.constant -1.17916031E-7 : f32
    %330 = vector.broadcast %cst_145 : f32 to vector<16x64xf32>
    %331 = arith.mulf %330, %316 : vector<16x64xf32>
    %cst_146 = arith.constant 2.35479656E-5 : f32
    %332 = vector.broadcast %cst_146 : f32 to vector<16x64xf32>
    %333 = arith.addf %331, %332 : vector<16x64xf32>
    %334 = arith.mulf %333, %316 : vector<16x64xf32>
    %cst_147 = arith.constant 0.00101796258 : f32
    %335 = vector.broadcast %cst_147 : f32 to vector<16x64xf32>
    %336 = arith.addf %334, %335 : vector<16x64xf32>
    %337 = arith.mulf %336, %316 : vector<16x64xf32>
    %cst_148 = arith.constant 0.0140704699 : f32
    %338 = vector.broadcast %cst_148 : f32 to vector<16x64xf32>
    %339 = arith.addf %337, %338 : vector<16x64xf32>
    %340 = arith.mulf %339, %316 : vector<16x64xf32>
    %cst_149 = arith.constant 0.110985048 : f32
    %341 = vector.broadcast %cst_149 : f32 to vector<16x64xf32>
    %342 = arith.addf %340, %341 : vector<16x64xf32>
    %343 = arith.mulf %342, %316 : vector<16x64xf32>
    %cst_150 = arith.constant 0.497469246 : f32
    %344 = vector.broadcast %cst_150 : f32 to vector<16x64xf32>
    %345 = arith.addf %343, %344 : vector<16x64xf32>
    %346 = arith.mulf %345, %316 : vector<16x64xf32>
    %cst_151 = arith.constant 1.000000e+00 : f32
    %347 = vector.broadcast %cst_151 : f32 to vector<16x64xf32>
    %348 = arith.addf %346, %347 : vector<16x64xf32>
    %349 = arith.mulf %315, %329 : vector<16x64xf32>
    %350 = arith.divf %349, %348 : vector<16x64xf32>
    %cst_152 = arith.constant 1.000000e+00 : f32
    %351 = vector.broadcast %cst_152 : f32 to vector<16x64xf32>
    %352 = arith.addf %351, %350 : vector<16x64xf32>
    %353 = arith.mulf %309, %352 : vector<16x64xf32>
    %c1_153 = arith.constant 1 : index
    %c0_154 = arith.constant 0 : index
    %c0_155 = arith.constant 0 : index
    %354 = vector.load %arg11[%c1_153, %c0_154, %c0_155] : memref<2x64x32xf32, #tpu.memory_space<vmem>>, vector<1x64x32xf32>
    %355 = vector.shape_cast %354 : vector<1x64x32xf32> to vector<64x32xf32>
    %cst_156 = arith.constant dense<0.000000e+00> : vector<16x32xf32>
    %356 = tpu.matmul %353, %355, %cst_156 {dimension_numbers = #tpu.dot_dimension_numbers<[1], [0], [0], [1], [0, 0, 1, 1], [], []>} : vector<16x64xf32>, vector<64x32xf32>, vector<16x32xf32> -> vector<16x32xf32>
    %c1_157 = arith.constant 1 : index
    %c0_158 = arith.constant 0 : index
    %c0_159 = arith.constant 0 : index
    %357 = vector.load %arg12[%c1_157, %c0_158, %c0_159] : memref<2x1x32xf32, #tpu.memory_space<vmem>>, vector<1x1x32xf32>
    %358 = vector.shape_cast %357 : vector<1x1x32xf32> to vector<1x32xf32>
    %359 = vector.broadcast %358 : vector<1x32xf32> to vector<16x32xf32>
    %360 = arith.addf %356, %359 : vector<16x32xf32>
    %361 = arith.addf %300, %360 : vector<16x32xf32>
    %c1_160 = arith.constant 1 : index
    %c0_161 = arith.constant 0 : index
    %c0_162 = arith.constant 0 : index
    %362 = vector.load %arg13[%c1_160, %c0_161, %c0_162] : memref<2x1x32xf32, #tpu.memory_space<vmem>>, vector<1x1x32xf32>
    %363 = vector.shape_cast %362 : vector<1x1x32xf32> to vector<1x32xf32>
    %c1_163 = arith.constant 1 : index
    %c0_164 = arith.constant 0 : index
    %c0_165 = arith.constant 0 : index
    %364 = vector.load %arg14[%c1_163, %c0_164, %c0_165] : memref<2x1x32xf32, #tpu.memory_space<vmem>>, vector<1x1x32xf32>
    %365 = vector.shape_cast %364 : vector<1x1x32xf32> to vector<1x32xf32>
    %cst_166 = arith.constant dense<0.000000e+00> : vector<16xf32>
    %366 = vector.multi_reduction <add>, %361, %cst_166 [1] : vector<16x32xf32> to vector<16xf32>
    %367 = vector.shape_cast %366 : vector<16xf32> to vector<16x1xf32>
    %cst_167 = arith.constant 3.200000e+01 : f32
    %368 = vector.broadcast %cst_167 : f32 to vector<16x1xf32>
    %369 = arith.divf %367, %368 : vector<16x1xf32>
    %370 = vector.broadcast %369 : vector<16x1xf32> to vector<16x32xf32>
    %371 = arith.subf %361, %370 : vector<16x32xf32>
    %372 = arith.mulf %371, %371 : vector<16x32xf32>
    %cst_168 = arith.constant dense<0.000000e+00> : vector<16xf32>
    %373 = vector.multi_reduction <add>, %372, %cst_168 [1] : vector<16x32xf32> to vector<16xf32>
    %374 = vector.shape_cast %373 : vector<16xf32> to vector<16x1xf32>
    %cst_169 = arith.constant 3.200000e+01 : f32
    %375 = vector.broadcast %cst_169 : f32 to vector<16x1xf32>
    %376 = arith.divf %374, %375 : vector<16x1xf32>
    %cst_170 = arith.constant 9.99999974E-6 : f32
    %377 = vector.broadcast %cst_170 : f32 to vector<16x1xf32>
    %378 = arith.addf %376, %377 : vector<16x1xf32>
    %379 = math.rsqrt %378 : vector<16x1xf32>
    %380 = vector.broadcast %379 : vector<16x1xf32> to vector<16x32xf32>
    %381 = arith.mulf %371, %380 : vector<16x32xf32>
    %382 = vector.broadcast %363 : vector<1x32xf32> to vector<16x32xf32>
    %383 = arith.mulf %381, %382 : vector<16x32xf32>
    %384 = vector.broadcast %365 : vector<1x32xf32> to vector<16x32xf32>
    %385 = arith.addf %383, %384 : vector<16x32xf32>
    %386 = vector.shape_cast %385 : vector<16x32xf32> to vector<2x8x32xf32>
    %387 = vector.extract_strided_slice %386 {offsets = [0, 7, 0], sizes = [2, 1, 32], strides = [1, 1, 1]} : vector<2x8x32xf32> to vector<2x1x32xf32>
    %388 = vector.shape_cast %387 : vector<2x1x32xf32> to vector<2x32xf32>
    %c0_171 = arith.constant 0 : index
    %c0_172 = arith.constant 0 : index
    %389 = vector.load %arg15[%c0_171, %c0_172] : memref<32x24xf32, #tpu.memory_space<vmem>>, vector<32x24xf32>
    %cst_173 = arith.constant dense<0.000000e+00> : vector<2x24xf32>
    %390 = tpu.matmul %388, %389, %cst_173 {dimension_numbers = #tpu.dot_dimension_numbers<[1], [0], [0], [1], [0, 0, 1, 1], [], []>} : vector<2x32xf32>, vector<32x24xf32>, vector<2x24xf32> -> vector<2x24xf32>
    %c0_174 = arith.constant 0 : index
    %c0_175 = arith.constant 0 : index
    %391 = vector.load %arg16[%c0_174, %c0_175] : memref<1x24xf32, #tpu.memory_space<vmem>>, vector<1x24xf32>
    %392 = vector.broadcast %391 : vector<1x24xf32> to vector<2x24xf32>
    %393 = arith.addf %390, %392 : vector<2x24xf32>
    %c0_176 = arith.constant 0 : index
    %c0_177 = arith.constant 0 : index
    %394 = vector.load %arg17[%c0_176, %c0_177] : memref<2x24xf32, #tpu.memory_space<vmem>>, vector<2x24xf32>
    tpu.vector_store %arg17[%c0_176, %c0_177], %393 {strides = array<i32>} : memref<2x24xf32, #tpu.memory_space<vmem>>, vector<2x24xf32>,
    return
  }
}

</mosaic_0001>

<bundles_post_ra>
// kernel: transformer_forecast_forward.1
= control target key start
LH: loop header
LB: loop body
LE: loop exit
PB: predicated region body
PF: predicated region fallthrough
CT: control target
= control target key end

     0   :  { %vm66_vm0 = vcmask 1043456   ;;  %vm59_vm1 = vcmask 31744   ;;  %vm159_vm2 = vcmask 261120   ;;  %v4721_v14 = vmov 0.0   ;;  %s4723_s28 = smov 96   ;;  %s4726_s30 = smov 120   ;;  %s5417_s1 = inlined_call_operand.vmem [shape: f32[4,32], index: 1, kind: input, shape index: {}]   ;;  %s5418_s0 = inlined_call_operand.vmem [shape: f32[2,8,4], index: 0, kind: input, shape index: {}]   ;;  %s5419_s3 = inlined_call_operand.vmem [shape: f32[2,32,96], index: 3, kind: input, shape index: {}]   ;;  %s5420_s2 = inlined_call_operand.vmem [shape: f32[8,32], index: 2, kind: input, shape index: {}]   ;;  %s5421_s4 = inlined_call_operand.vmem [shape: f32[2,1,96], index: 4, kind: input, shape index: {}]   ;;  %s5422_s5 = inlined_call_operand.vmem [shape: f32[2,32,32], index: 5, kind: input, shape index: {}]   ;;  %s5423_s6 = inlined_call_operand.vmem [shape: f32[2,1,32], index: 6, kind: input, shape index: {}]   ;;  %s5424_s9 = inlined_call_operand.vmem [shape: f32[2,32,64], index: 9, kind: input, shape index: {}]   ;;  %s5425_s7 = inlined_call_operand.vmem [shape: f32[2,1,32], index: 7, kind: input, shape index: {}]   ;;  %s5426_s8 = inlined_call_operand.vmem [shape: f32[2,1,32], index: 8, kind: input, shape index: {}]   ;;  %s5427_s11 = inlined_call_operand.vmem [shape: f32[2,64,32], index: 11, kind: input, shape index: {}]   ;;  %s5428_s10 = inlined_call_operand.vmem [shape: f32[2,1,64], index: 10, kind: input, shape index: {}]   ;;  %s5429_s12 = inlined_call_operand.vmem [shape: f32[2,1,32], index: 12, kind: input, shape index: {}]   ;;  %s5430_s13 = inlined_call_operand.vmem [shape: f32[2,1,32], index: 13, kind: input, shape index: {}]   ;;  %s5431_s14 = inlined_call_operand.vmem [shape: f32[2,1,32], index: 14, kind: input, shape index: {}]   ;;  %s5432_s15 = inlined_call_operand.vmem [shape: f32[32,24], index: 15, kind: input, shape index: {}]   ;;  %s5433_s16 = inlined_call_operand.vmem [shape: f32[1,24], index: 16, kind: input, shape index: {}]   ;;  %s5434_s17 = inlined_call_operand.vmem [shape: f32[2,24], index: 17, kind: output, shape index: {}]  }
   0x1   :  { %5448 = sst [smem:[#allocation2_spill]] %s5417_s1  ;;  %v148_v3 = vld [vmem:[%s5419_s3] sm:$0xff]  ;;  %v149_v4 = vld [vmem:[%s5419_s3 + $0x8] sm:$0xff]  ;;  %v150_v6 = vld [vmem:[%s5419_s3 + $0x10] sm:$0xff]  ;;  %vm4722_vm3 = vmmov 0   ;;  %vm244_vm4 = vcmask 64512  }
   0x2   :  { %5449 = sst [smem:[#allocation3_spill]] %s5418_s0  ;;  %s5450_s26 = sld [smem:[#allocation2_spill]]  ;;  %v4530_v5 = vpack.c.bf16 %v149_v4, %v148_v3  ;;  %v151_v7 = vld [vmem:[%s5419_s3 + $0x18] sm:$0xff]  ;;  %v145_v9 = vld [vmem:[%s5420_s2] sm:$0xff]  ;;  %vm1589_vm5 = vcmask 195584   ;;  %vm1586_vm6 = vcmask 130048  }
   0x3   :  { %s5451_s29 = sld [smem:[#allocation3_spill]]  ;;  %v4534_v8 = vpack.c.bf16 %v151_v7, %v150_v6  ;;  %v4008_v15 = vld [vmem:[%s5421_s4] ss:$0 sm:$0xff]  ;;  %s4725_s1 = smov 88   ;;  %vm1898_vm7 = vcmask 523264   ;;  %vm3925_vm8 = vcmask 1041409  }
   0x4   :  { %4531 = vmatprep.subr.bf16.mxu1 %v4530_v5  ;;  %s4727_s18 = smov 56   ;;  %s4728_s19 = smov 112   ;;  %vm3999_vm9 = vcmask 189440  }
   0x5   :  { %4533 = vmatpush3.bf16.msra.mxu1 %v4530_v5  ;;  %s4729_s0 = smov 80   ;;  %s4730_s20 = smov 48  }
   0x6   :  { %4535 = vmatprep.subr.bf16.mxu1 %v4534_v8  ;;  %s5444_s21 = smov 72   ;;  %s5442_s22 = smov 104  }
   0x7   :  { %s5440_s23 = smov 40   ;;  %s5438_s24 = smov 8  }
   0x8   :  { %v58_v0 = vld [vmem:[%s5450_s26] sm:$0xf]  ;;  %s5436_s25 = smov 16   ;;  %s5446_s26 = smov 24  }
   0x9   :  { %v56_v1 = vld [vmem:[%s5451_s29] sm:$0xff]  ;;  %v57_v2 = vld [vmem:[%s5451_s29 + $0x8] sm:$0xff]  ;;  %4250 = vmatprep.subr.msk.mxu0 %vm66_vm0, %v58_v0  ;;  %4537 = vmatpush3.bf16.msra.mxu1 %v4534_v8  ;;  %s4724_s29 = smov 64  }
   0xa   :  { %4252 = vmatprep.mubr.msk.f32.mxu0 %vm59_vm1, %v56_v1  ;;  %4251 = vmatpush3.msk.msra.mxu0 %vm66_vm0, %v58_v0 }
   0xb   :  { %4253 = vmatmul.mubr.msk.f32.vlgmr.msra.gmra.mrb[0].mxu0 %vm59_vm1, %v57_v2  ;;  %4266 = vmatprep.subr.mxu0 %v4721_v14 }
   0xc   :  { %4286 = vmatprep.subr.mxu1 %v4721_v14  ;;  %4268 = vmatprep.mubr.msk.f32.mxu0 %vm4722_vm3, %v4721_v14 }
  0xde   :  { %v4254_v10 = vpop.f32.mrb[0].mxu0 }
  0xdf   :  { %v136_v11 = vpop.f32.mrb[1].mxu0  ;;  %v4854_v13 = vadd.f32 %v4254_v10, %v145_v9 }
  0xe0   :  { %v4852_v12 = vadd.f32 %v145_v9, %v136_v11 }
  0xe2   :  { %4263 = vmatprep.mubr.msk.f32.mxu1 %vm159_vm2, %v4852_v12 }
  0xe3   :  { %4264 = vmatmul.mubr.msk.f32.vlgmr.msra.gmra.mrb[0].mxu1 %vm159_vm2, %v4854_v13 }
  0xe4   :  { %4288 = vmatprep.mubr.msk.f32.mxu1 %vm4722_vm3, %v4721_v14 }
 0x1b6   :  { %v4265_v16 = vpop.f32.mrb[0].mxu1 }
 0x1b7   :  { %v232_v17 = vpop.f32.mrb[1].mxu1  ;;  %v4873_v19 = vadd.f32 %v4265_v16, %v4008_v15 }
 0x1b8   :  { %v4869_v18 = vadd.f32 %v4008_v15, %v232_v17 }
 0x1ba   :  { %242 = vrot.lane.b32.xlu0 %v4869_v18, %s4723_s28 }
 0x1be   :  { %320 = vrot.lane.b32.xlu0 %v4873_v19, %s4723_s28 }
 0x22c   :  { %v243_v20 = vpop.permute.xlu0 %242 }
 0x22d   :  { %4267 = vmatpush3.xpose.msk.msra.mxu0 %vm244_vm4, %v243_v20 }
 0x22e   :  { %4271 = vmatprep.subr.mxu0 %v4721_v14 }
 0x230   :  { %4269 = vmatmul.mubr.msk.f32.vlgmr.msra.gmra.mrb[2].mxu0 %vm244_vm4, %v4869_v18  ;;  %v321_v21 = vpop.permute.xlu0 %320 }
 0x231   :  { %4272 = vmatpush3.xpose.msk.msra.mxu0 %vm244_vm4, %v321_v21  ;;  %4273 = vmatprep.mubr.msk.f32.mxu0 %vm4722_vm3, %v4721_v14 }
 0x232   :  { %4276 = vmatprep.subr.mxu0 %v4721_v14 }
 0x234   :  { %4274 = vmatmul.mubr.msk.f32.vlgmr.msra.gmra.mrb[4].mxu0 %vm244_vm4, %v4873_v19 }
 0x235   :  { %4278 = vmatprep.mubr.msk.f32.mxu0 %vm4722_vm3, %v4721_v14 }
 0x303   :  { %v315_v22 = vpop.f32.mrb[2].mxu0 }
 0x304   :  { %v4270_v23 = vpop.f32.mrb[3].mxu0  ;;  %v396_v24 = vsel %vm244_vm4, %v315_v22, -inf }
 0x305   :  { %397 = vmax.xlane.f32.xlu1 %v396_v24 }
 0x307   :  { %v392_v25 = vpop.f32.mrb[4].mxu0 }
 0x308   :  { %v4275_v26 = vpop.f32.mrb[5].mxu0  ;;  %v399_v27 = vsel %vm244_vm4, %v392_v25, -inf }
 0x309   :  { %400 = vmax.xlane.f32.xlu1 %v399_v27 }
 0x31a   :  { %418 = vrot.lane.b32.xlu1 %v4869_v18, %s4724_s29 }
 0x31e   :  { %494 = vrot.lane.b32.xlu1 %v4873_v19, %s4724_s29 }
 0x322   :  { %572 = vrot.lane.b32.xlu1 %v4869_v18, %s4725_s1 }
 0x326   :  { %650 = vrot.lane.b32.xlu1 %v4873_v19, %s4725_s1 }
 0x392   :  { %v398_v28 = vpop.xlane.xlu1 %397 }
 0x393   :  { %v402_v29 = vsub.f32 %v315_v22, %v398_v28 }
 0x395   :  { %v404_v30 = vmul.f32 1.442695, %v402_v29 }
 0x396   :  { %v401_v31 = vpop.xlane.xlu1 %400 }
 0x397   :  { %4633 = vpow2.f32 %v404_v30  ;;  %v403_v32 = vsub.f32 %v392_v25, %v401_v31 }
 0x399   :  { %v406_v33 = vmul.f32 1.442695, %v403_v32 }
 0x39a   :  { %v419_v34 = vpop.permute.xlu1 %418 }
 0x39b   :  { %4635 = vpow2.f32 %v406_v33  ;;  %4277 = vmatpush3.msra.mxu0 %v419_v34 }
 0x39c   :  { %4281 = vmatprep.subr.mxu0 %v4721_v14 }
 0x39e   :  { %v495_v35 = vpop.permute.xlu1 %494 }
 0x3a1   :  { %v4634_v36 = vpop.eup %4633 }
 0x3a2   :  { %v573_v37 = vpop.permute.xlu1 %572  ;;  %v408_v38 = vsel %vm244_vm4, %v4634_v36, 0.0 }
 0x3a3   :  { %409 = vadd.xlane.f32.xlu0 %v408_v38  ;;  %4287 = vmatpush3.xpose.msk.msra.mxu1 %vm244_vm4, %v573_v37 }
 0x3a4   :  { %4296 = vmatprep.subr.mxu1 %v4721_v14 }
 0x3a5   :  { %v4636_v39 = vpop.eup %4635 }
 0x3a6   :  { %v411_v40 = vsel %vm244_vm4, %v4636_v39, 0.0  ;;  %v651_v41 = vpop.permute.xlu1 %650 }
 0x3a7   :  { %412 = vadd.xlane.f32.xlu1 %v411_v40 }
 0x3b8   :  { %648 = vrot.lane.b32.xlu1 %v4873_v19, %s4726_s30 }
 0x3b9   :  { %570 = vrot.lane.b32.xlu0 %v4869_v18, %s4726_s30 }
 0x430   :  { %v410_v42 = vpop.xlane.xlu0 %409 }
 0x431   :  { %4637 = vrcp.f32 %v410_v42 }
 0x434   :  { %v413_v43 = vpop.xlane.xlu1 %412  ;;  %v571_v44 = vpop.permute.xlu0 %570 }
 0x435   :  { %4639 = vrcp.f32 %v413_v43  ;;  %4289 = vmatmul.mubr.msk.f32.vlgmr.msra.gmra.mrb[2].mxu1 %vm244_vm4, %v571_v44 }
 0x436   :  { %4298 = vmatprep.mubr.msk.f32.mxu1 %vm4722_vm3, %v4721_v14 }
 0x438   :  { %v649_v49 = vpop.permute.xlu1 %648 }
 0x43b   :  { %v4638_v45 = vpop.eup %4637 }
 0x43c   :  { %v415_v46 = vmul.f32 %v4638_v45, %v4634_v36 }
 0x43e   :  { %4279 = vmatmul.mubr.msk.f32.vlgmr.msra.gmra.mrb[6].mxu0 %vm244_vm4, %v415_v46 }
 0x43f   :  { %v4640_v47 = vpop.eup %4639  ;;  %4282 = vmatpush3.msra.mxu0 %v495_v35  ;;  %4283 = vmatprep.mubr.msk.f32.mxu0 %vm4722_vm3, %v4721_v14 }
 0x440   :  { %v417_v48 = vmul.f32 %v4640_v47, %v4636_v39  ;;  %4291 = vmatprep.subr.mxu0 %v4721_v14 }
 0x442   :  { %4284 = vmatmul.mubr.msk.f32.vlgmr.msra.gmra.mrb[8].mxu0 %vm244_vm4, %v417_v48 }
 0x443   :  { %4293 = vmatprep.mubr.msk.f32.mxu0 %vm4722_vm3, %v4721_v14 }
 0x446   :  { %4292 = vmatpush3.xpose.msk.msra.mxu0 %vm244_vm4, %v651_v41 }
 0x447   :  { %4301 = vmatprep.subr.mxu0 %v4721_v14 }
 0x449   :  { %4294 = vmatmul.mubr.msk.f32.vlgmr.msra.gmra.mrb[10].mxu0 %vm244_vm4, %v649_v49 }
 0x44a   :  { %4303 = vmatprep.mubr.msk.f32.mxu0 %vm4722_vm3, %v4721_v14 }
 0x508   :  { %v644_v50 = vpop.f32.mrb[2].mxu1 }
 0x509   :  { %v4290_v51 = vpop.f32.mrb[3].mxu1  ;;  %v726_v52 = vsel %vm244_vm4, %v644_v50, -inf }
 0x50a   :  { %727 = vmax.xlane.f32.xlu1 %v726_v52 }
 0x511   :  { %v4924_v53 = vpop.f32.mrb[6].mxu0 }
 0x512   :  { %v4280_v54 = vpop.f32.mrb[7].mxu0 }
 0x515   :  { %v4926_v55 = vpop.f32.mrb[8].mxu0 }
 0x516   :  { %v4285_v56 = vpop.f32.mrb[9].mxu0 }
 0x51c   :  { %v722_v57 = vpop.f32.mrb[10].mxu0 }
 0x51d   :  { %v4295_v58 = vpop.f32.mrb[11].mxu0  ;;  %v729_v59 = vsel %vm244_vm4, %v722_v57, -inf }
 0x51e   :  { %730 = vmax.xlane.f32.xlu0 %v729_v59 }
 0x534   :  { %824 = vrot.lane.b32.xlu0 %v4873_v19, %s4727_s18 }
 0x538   :  { %900 = vrot.lane.b32.xlu0 %v4869_v18, %s4728_s19 }
 0x597   :  { %v728_v60 = vpop.xlane.xlu1 %727 }
 0x598   :  { %v732_v61 = vsub.f32 %v644_v50, %v728_v60 }
 0x59a   :  { %v734_v62 = vmul.f32 1.442695, %v732_v61 }
 0x59c   :  { %4641 = vpow2.f32 %v734_v62 }
 0x5a6   :  { %v4642_v63 = vpop.eup %4641 }
 0x5a7   :  { %v738_v0 = vsel %vm244_vm4, %v4642_v63, 0.0 }
 0x5a8   :  { %739 = vadd.xlane.f32.xlu1 %v738_v0 }
 0x5ab   :  { %v731_v1 = vpop.xlane.xlu0 %730 }
 0x5ac   :  { %v733_v3 = vsub.f32 %v722_v57, %v731_v1 }
 0x5ae   :  { %v736_v4 = vmul.f32 1.442695, %v733_v3 }
 0x5af   :  { %v825_v2 = vpop.permute.xlu0 %824 }
 0x5b0   :  { %4302 = vmatpush3.msra.mxu0 %v825_v2  ;;  %4643 = vpow2.f32 %v736_v4 }
 0x5b1   :  { %4311 = vmatprep.subr.mxu0 %v4721_v14 }
 0x5b3   :  { %v901_v15 = vpop.permute.xlu0 %900 }
 0x5b9   :  { %748 = vrot.lane.b32.xlu1 %v4869_v18, %s4727_s18 }
 0x5ba   :  { %v4644_v5 = vpop.eup %4643 }
 0x5bb   :  { %v741_v6 = vsel %vm244_vm4, %v4644_v5, 0.0 }
 0x5bd   :  { %902 = vrot.lane.b32.xlu1 %v4869_v18, %s4729_s0 }
 0x5c1   :  { %980 = vrot.lane.b32.xlu1 %v4873_v19, %s4729_s0 }
 0x5e5   :  { %742 = vadd.xlane.f32.xlu1 %v741_v6 }
 0x5f6   :  { %978 = vrot.lane.b32.xlu1 %v4873_v19, %s4728_s19 }
 0x635   :  { %v740_v7 = vpop.xlane.xlu1 %739 }
 0x636   :  { %4645 = vrcp.f32 %v740_v7 }
 0x639   :  { %v749_v8 = vpop.permute.xlu1 %748 }
 0x63a   :  { %4297 = vmatpush3.msra.mxu1 %v749_v8 }
 0x63b   :  { %4306 = vmatprep.subr.mxu1 %v4721_v14 }
 0x63d   :  { %v903_v11 = vpop.permute.xlu1 %902 }
 0x640   :  { %v4646_v9 = vpop.eup %4645 }
 0x641   :  { %v745_v10 = vmul.f32 %v4646_v9, %v4642_v63  ;;  %v981_v16 = vpop.permute.xlu1 %980 }
 0x643   :  { %4299 = vmatmul.mubr.msk.f32.vlgmr.msra.gmra.mrb[4].mxu1 %vm244_vm4, %v745_v10 }
 0x644   :  { %4307 = vmatpush3.xpose.msk.msra.mxu1 %vm244_vm4, %v903_v11  ;;  %4308 = vmatprep.mubr.msk.f32.mxu1 %vm4722_vm3, %v4721_v14 }
 0x645   :  { %4316 = vmatprep.subr.mxu1 %v4721_v14 }
 0x647   :  { %4309 = vmatmul.mubr.msk.f32.vlgmr.msra.gmra.mrb[6].mxu1 %vm244_vm4, %v901_v15 }
 0x648   :  { %4318 = vmatprep.mubr.msk.f32.mxu1 %vm4722_vm3, %v4721_v14 }
 0x672   :  { %v743_v17 = vpop.xlane.xlu1 %742 }
 0x673   :  { %4647 = vrcp.f32 %v743_v17 }
 0x676   :  { %v979_v22 = vpop.permute.xlu1 %978 }
 0x67d   :  { %v4648_v20 = vpop.eup %4647 }
 0x67e   :  { %v747_v21 = vmul.f32 %v4648_v20, %v4644_v5 }
 0x680   :  { %4304 = vmatmul.mubr.msk.f32.vlgmr.msra.gmra.mrb[12].mxu0 %vm244_vm4, %v747_v21 }
 0x681   :  { %4312 = vmatpush3.xpose.msk.msra.mxu0 %vm244_vm4, %v981_v16  ;;  %4313 = vmatprep.mubr.msk.f32.mxu0 %vm4722_vm3, %v4721_v14 }
 0x682   :  { %4321 = vmatprep.subr.mxu0 %v4721_v14 }
 0x684   :  { %4314 = vmatmul.mubr.msk.f32.vlgmr.msra.gmra.mrb[14].mxu0 %vm244_vm4, %v979_v22 }
 0x685   :  { %4323 = vmatprep.mubr.msk.f32.mxu0 %vm4722_vm3, %v4721_v14 }
 0x716   :  { %v4961_v23 = vpop.f32.mrb[4].mxu1 }
 0x717   :  { %v4300_v24 = vpop.f32.mrb[5].mxu1 }
 0x71a   :  { %v974_v25 = vpop.f32.mrb[6].mxu1 }
 0x71b   :  { %v4310_v26 = vpop.f32.mrb[7].mxu1  ;;  %v1056_v27 = vsel %vm244_vm4, %v974_v25, -inf }
 0x71c   :  { %1057 = vmax.xlane.f32.xlu0 %v1056_v27  ;;  %v1594_v26 = vld [vmem:[%s5422_s5 + $0x10] sm:$0xff] }
 0x753   :  { %v4964_v28 = vpop.f32.mrb[12].mxu0 }
 0x754   :  { %v4305_v29 = vpop.f32.mrb[13].mxu0 }
 0x757   :  { %v1052_v30 = vpop.f32.mrb[14].mxu0 }
 0x758   :  { %v4315_v31 = vpop.f32.mrb[15].mxu0  ;;  %v1059_v32 = vsel %vm244_vm4, %v1052_v30, -inf }
 0x759   :  { %1060 = vmax.xlane.f32.xlu1 %v1059_v32 }
 0x76a   :  { %1078 = vrot.lane.b32.xlu1 %v4869_v18, %s4730_s20 }
 0x76e   :  { %1232 = vrot.lane.b32.xlu1 %v4869_v18, %s5444_s21 }
 0x772   :  { %1310 = vrot.lane.b32.xlu1 %v4873_v19, %s5444_s21 }
 0x776   :  { %1308 = vrot.lane.b32.xlu1 %v4873_v19, %s5442_s22 }
 0x7a9   :  { %v1058_v33 = vpop.xlane.xlu0 %1057 }
 0x7aa   :  { %v1062_v34 = vsub.f32 %v974_v25, %v1058_v33  ;;  %v1593_v25 = vld [vmem:[%s5422_s5 + $0x8] sm:$0xff] }
 0x7ac   :  { %v1064_v35 = vmul.f32 1.442695, %v1062_v34 }
 0x7ae   :  { %4649 = vpow2.f32 %v1064_v35 }
 0x7b8   :  { %v4650_v36 = vpop.eup %4649 }
 0x7b9   :  { %v1068_v37 = vsel %vm244_vm4, %v4650_v36, 0.0 }
 0x7ba   :  { %1069 = vadd.xlane.f32.xlu0 %v1068_v37 }
 0x7d0   :  { %1154 = vrot.lane.b32.xlu0 %v4873_v19, %s4730_s20 }
 0x7e6   :  { %v1061_v38 = vpop.xlane.xlu1 %1060 }
 0x7e7   :  { %v1063_v39 = vsub.f32 %v1052_v30, %v1061_v38 }
 0x7e9   :  { %v1066_v40 = vmul.f32 1.442695, %v1063_v39 }
 0x7ea   :  { %v1079_v41 = vpop.permute.xlu1 %1078 }
 0x7eb   :  { %4651 = vpow2.f32 %v1066_v40  ;;  %4317 = vmatpush3.msra.mxu1 %v1079_v41 }
 0x7ec   :  { %4326 = vmatprep.subr.mxu1 %v4721_v14 }
 0x7ee   :  { %v1233_v48 = vpop.permute.xlu1 %1232 }
 0x7f2   :  { %v1311_v52 = vpop.permute.xlu1 %1310 }
 0x7f5   :  { %v4652_v42 = vpop.eup %4651 }
 0x7f6   :  { %v1071_v43 = vsel %vm244_vm4, %v4652_v42, 0.0  ;;  %v1309_v56 = vpop.permute.xlu1 %1308 }
 0x7f7   :  { %1072 = vadd.xlane.f32.xlu0 %v1071_v43 }
 0x80d   :  { %1230 = vrot.lane.b32.xlu0 %v4869_v18, %s5442_s22 }
 0x847   :  { %v1070_v44 = vpop.xlane.xlu0 %1069 }
 0x848   :  { %4653 = vrcp.f32 %v1070_v44 }
 0x84b   :  { %v1155_v45 = vpop.permute.xlu0 %1154 }
 0x84c   :  { %4322 = vmatpush3.msra.mxu0 %v1155_v45 }
 0x84d   :  { %4331 = vmatprep.subr.mxu0 %v4721_v14 }
 0x852   :  { %v4654_v46 = vpop.eup %4653 }
 0x853   :  { %v1075_v47 = vmul.f32 %v4654_v46, %v4650_v36 }
 0x855   :  { %4319 = vmatmul.mubr.msk.f32.vlgmr.msra.gmra.mrb[8].mxu1 %vm244_vm4, %v1075_v47 }
 0x856   :  { %4327 = vmatpush3.xpose.msk.msra.mxu1 %vm244_vm4, %v1233_v48  ;;  %4328 = vmatprep.mubr.msk.f32.mxu1 %vm4722_vm3, %v4721_v14 }
 0x857   :  { %4336 = vmatprep.subr.mxu1 %v4721_v14 }
 0x884   :  { %v1073_v49 = vpop.xlane.xlu0 %1072 }
 0x885   :  { %4655 = vrcp.f32 %v1073_v49 }
 0x888   :  { %v1231_v50 = vpop.permute.xlu0 %1230 }
 0x889   :  { %4329 = vmatmul.mubr.msk.f32.vlgmr.msra.gmra.mrb[10].mxu1 %vm244_vm4, %v1231_v50 }
 0x88a   :  { %4338 = vmatprep.mubr.msk.f32.mxu1 %vm4722_vm3, %v4721_v14 }
 0x88f   :  { %v4656_v51 = vpop.eup %4655 }
 0x890   :  { %v1077_v54 = vmul.f32 %v4656_v51, %v4652_v42 }
 0x892   :  { %4324 = vmatmul.mubr.msk.f32.vlgmr.msra.gmra.mrb[16].mxu0 %vm244_vm4, %v1077_v54 }
 0x893   :  { %4332 = vmatpush3.xpose.msk.msra.mxu0 %vm244_vm4, %v1311_v52  ;;  %4333 = vmatprep.mubr.msk.f32.mxu0 %vm4722_vm3, %v4721_v14 }
 0x894   :  { %4341 = vmatprep.subr.mxu0 %v4721_v14 }
 0x896   :  { %4334 = vmatmul.mubr.msk.f32.vlgmr.msra.gmra.mrb[18].mxu0 %vm244_vm4, %v1309_v56 }
 0x897   :  { %4343 = vmatprep.mubr.msk.f32.mxu0 %vm4722_vm3, %v4721_v14 }
 0x928   :  { %v1150_v57 = vpop.f32.mrb[8].mxu1 }
 0x929   :  { %v4320_v58 = vpop.f32.mrb[9].mxu1 }
 0x95c   :  { %v1304_v59 = vpop.f32.mrb[10].mxu1 }
 0x95d   :  { %v4330_v60 = vpop.f32.mrb[11].mxu1  ;;  %v1386_v61 = vsel %vm244_vm4, %v1304_v59, -inf }
 0x95e   :  { %1387 = vmax.xlane.f32.xlu0 %v1386_v61 }
 0x965   :  { %v1226_v62 = vpop.f32.mrb[16].mxu0 }
 0x966   :  { %v4325_v63 = vpop.f32.mrb[17].mxu0 }
 0x969   :  { %v1382_v0 = vpop.f32.mrb[18].mxu0 }
 0x96a   :  { %v4335_v1 = vpop.f32.mrb[19].mxu0  ;;  %v1389_v2 = vsel %vm244_vm4, %v1382_v0, -inf }
 0x96b   :  { %1390 = vmax.xlane.f32.xlu1 %v1389_v2  ;;  %v1733_v2 = vld [vmem:[%s5424_s9 + $0x10] sm:$0xff] }
 0x97c   :  { %1408 = vrot.lane.b32.xlu1 %v4869_v18, %s5440_s23 }
 0x980   :  { %1562 = vrot.lane.b32.xlu1 %v4961_v23, %s5438_s24 }
 0x984   :  { %1564 = vrot.lane.b32.xlu1 %v4964_v28, %s5438_s24  ;;  %v1595_v28 = vld [vmem:[%s5422_s5 + $0x18] sm:$0xff]  ;;  %s5457_s24 = smov 24  }
 0x985   :  { %v4542_v29 = vpack.c.bf16 %v1595_v28, %v1594_v26  ;;  %v1886_v28 = vld [vmem:[%s5427_s11 + $0x18] sm:$0xff] }
 0x988   :  { %1572 = vrot.lane.b32.xlu1 %v1226_v62, %s5436_s25 }
 0x9eb   :  { %v1388_v3 = vpop.xlane.xlu0 %1387 }
 0x9ec   :  { %v1392_v4 = vsub.f32 %v1304_v59, %v1388_v3  ;;  %v1734_v3 = vld [vmem:[%s5424_s9 + $0x18] sm:$0xff] }
 0x9ee   :  { %v1394_v5 = vmul.f32 1.442695, %v1392_v4  ;;  %v4550_v4 = vpack.c.bf16 %v1734_v3, %v1733_v2 }
 0x9f0   :  { %4657 = vpow2.f32 %v1394_v5 }
 0x9f8   :  { %v1391_v6 = vpop.xlane.xlu1 %1390 }
 0x9f9   :  { %v1393_v7 = vsub.f32 %v1382_v0, %v1391_v6  ;;  %v1732_v0 = vld [vmem:[%s5424_s9 + $0x8] sm:$0xff] }
 0x9fa   :  { %v4658_v8 = vpop.eup %4657 }
 0x9fb   :  { %v1396_v9 = vmul.f32 1.442695, %v1393_v7  ;;  %v1398_v18 = vsel %vm244_vm4, %v4658_v8, 0.0 }
 0x9fc   :  { %v1409_v10 = vpop.permute.xlu1 %1408  ;;  %1399 = vadd.xlane.f32.xlu0 %v1398_v18 }
 0x9fd   :  { %4659 = vpow2.f32 %v1396_v9  ;;  %4337 = vmatpush3.msra.mxu1 %v1409_v10 }
 0xa00   :  { %v1563_v34 = vpop.permute.xlu1 %1562 }
 0xa01   :  { %v1584_v36 = vsel %vm244_vm4, %v4924_v53, %v1563_v34  ;;  %v4035_v53 = vld [vmem:[%s5423_s6] ss:$0 sm:$0xff]  ;;  %v1890_v34 = vld [vmem:[%s5427_s11 + $0x38] sm:$0xff] }
 0xa04   :  { %v1565_v40 = vpop.permute.xlu1 %1564 }
 0xa05   :  { %v1585_v42 = vsel %vm244_vm4, %v4926_v55, %v1565_v40 }
 0xa07   :  { %v4660_v11 = vpop.eup %4659 }
 0xa08   :  { %v1401_v15 = vsel %vm244_vm4, %v4660_v11, 0.0  ;;  %v1573_v41 = vpop.permute.xlu1 %1572 }
 0xa09   :  { %1402 = vadd.xlane.f32.xlu0 %v1401_v15  ;;  %v1588_v43 = vsel %vm1586_vm6, %v1585_v42, %v1573_v41 }
 0xa1f   :  { %1484 = vrot.lane.b32.xlu0 %v4873_v19, %s5440_s23  ;;  %v1592_v19 = vld [vmem:[%s5422_s5] sm:$0xff] }
 0xa20   :  { %v4538_v27 = vpack.c.bf16 %v1593_v25, %v1592_v19  ;;  %v1883_v19 = vld [vmem:[%s5427_s11] sm:$0xff]  ;;  %v1884_v25 = vld [vmem:[%s5427_s11 + $0x8] sm:$0xff] }
 0xa21   :  { %v4554_v26 = vpack.c.bf16 %v1884_v25, %v1883_v19 }
 0xa22   :  { %4539 = vmatprep.subr.bf16.mxu1 %v4538_v27 }
 0xa23   :  { %1570 = vrot.lane.b32.xlu0 %v1150_v57, %s5436_s25 }
 0xa89   :  { %v1400_v16 = vpop.xlane.xlu0 %1399 }
 0xa8a   :  { %4661 = vrcp.f32 %v1400_v16  ;;  %v4039_v16 = vld [vmem:[%s5426_s8] ss:$0 sm:$0xff] }
 0xa94   :  { %v4662_v17 = vpop.eup %4661 }
 0xa95   :  { %v1405_v20 = vmul.f32 %v4662_v17, %v4658_v8 }
 0xa96   :  { %v1403_v21 = vpop.xlane.xlu0 %1402 }
 0xa97   :  { %4663 = vrcp.f32 %v1403_v21  ;;  %4339 = vmatmul.mubr.msk.f32.vlgmr.msra.gmra.mrb[12].mxu1 %vm244_vm4, %v1405_v20 }
 0xa98   :  { %4541 = vmatpush3.bf16.msra.mxu1 %v4538_v27  ;;  %v1885_v27 = vld [vmem:[%s5427_s11 + $0x10] sm:$0xff] }
 0xa99   :  { %4543 = vmatprep.subr.bf16.mxu1 %v4542_v29 }
 0xa9a   :  { %v1485_v22 = vpop.permute.xlu0 %1484 }
 0xa9b   :  { %4342 = vmatpush3.msra.mxu0 %v1485_v22 }
 0xa9c   :  { %4545 = vmatpush3.bf16.msra.mxu1 %v4542_v29  ;;  %v4558_v29 = vpack.c.bf16 %v1886_v28, %v1885_v27 }
 0xa9d   :  { %4555 = vmatprep.subr.bf16.mxu1 %v4554_v26 }
 0xa9e   :  { %v1571_v35 = vpop.permute.xlu0 %1570 }
 0xa9f   :  { %v1587_v37 = vsel %vm1586_vm6, %v1584_v36, %v1571_v35  ;;  %v4040_v36 = vld [vmem:[%s5428_s10] ss:$0 sm:$0xff] }
 0xaa1   :  { %v4664_v23 = vpop.eup %4663 }
 0xaa2   :  { %v1407_v24 = vmul.f32 %v4664_v23, %v4660_v11  ;;  %v4038_v11 = vld [vmem:[%s5425_s7] ss:$0 sm:$0xff] }
 0xaa4   :  { %4344 = vmatmul.mubr.msk.f32.vlgmr.msra.gmra.mrb[20].mxu0 %vm244_vm4, %v1407_v24 }
 0xb6a   :  { %v1480_v30 = vpop.f32.mrb[12].mxu1 }
 0xb6b   :  { %1578 = vrot.lane.b32.xlu0 %v1480_v30, %s5446_s26  ;;  %v4340_v31 = vpop.f32.mrb[13].mxu1  ;;  %v1887_v30 = vld [vmem:[%s5427_s11 + $0x20] sm:$0xff] }
 0xb6c   :  { %v1888_v31 = vld [vmem:[%s5427_s11 + $0x28] sm:$0xff] }
 0xb77   :  { %v1556_v32 = vpop.f32.mrb[20].mxu0 }
 0xb78   :  { %1580 = vrot.lane.b32.xlu1 %v1556_v32, %s5446_s26  ;;  %v4345_v33 = vpop.f32.mrb[21].mxu0  ;;  %v4562_v32 = vpack.c.bf16 %v1888_v31, %v1887_v30 }
 0xb79   :  { %v1889_v33 = vld [vmem:[%s5427_s11 + $0x30] sm:$0xff] }
 0xb7a   :  { %v4566_v35 = vpack.c.bf16 %v1890_v34, %v1889_v33 }
 0xbdd   :  { %v1579_v38 = vpop.permute.xlu0 %1578 }
 0xbde   :  { %v1590_v39 = vsel %vm1589_vm5, %v1587_v37, %v1579_v38 }
 0xbdf   :  { %4354 = vmatprep.mubr.msk.f32.mxu1 %vm159_vm2, %v1590_v39 }
 0xbea   :  { %v1581_v44 = vpop.permute.xlu1 %1580 }
 0xbeb   :  { %v1591_v45 = vsel %vm1589_vm5, %v1588_v43, %v1581_v44 }
 0xbec   :  { %4355 = vmatmul.mubr.msk.f32.vlgmr.msra.gmra.mrb[14].mxu1 %vm159_vm2, %v1591_v45 }
 0xbed   :  { %4557 = vmatpush3.bf16.msra.mxu1 %v4554_v26 }
 0xbee   :  { %4559 = vmatprep.subr.bf16.mxu1 %v4558_v29 }
 0xbf1   :  { %4561 = vmatpush3.bf16.msra.mxu1 %v4558_v29 }
 0xbf2   :  { %4563 = vmatprep.subr.bf16.mxu1 %v4562_v32 }
 0xbf5   :  { %4565 = vmatpush3.bf16.msra.mxu1 %v4562_v32 }
 0xbf6   :  { %4567 = vmatprep.subr.bf16.mxu1 %v4566_v35 }
 0xbf9   :  { %4569 = vmatpush3.bf16.msra.mxu1 %v4566_v35 }
 0xbfa   :  { %4408 = vmatprep.subr.mxu1 %v4721_v14 }
 0xcbf   :  { %v4356_v46 = vpop.f32.mrb[14].mxu1 }
 0xcc0   :  { %v1681_v47 = vadd.f32 %v4356_v46, %v4035_v53  ;;  %v1675_v48 = vpop.f32.mrb[15].mxu1 }
 0xcc1   :  { %v1676_v49 = vadd.f32 %v4035_v53, %v1675_v48 }
 0xcc2   :  { %v1685_v50 = vadd.f32 %v1681_v47, %v4854_v13 }
 0xcc3   :  { %v1684_v51 = vadd.f32 %v1676_v49, %v4852_v12  ;;  %v1731_v12 = vld [vmem:[%s5424_s9] sm:$0xff] }
 0xcc4   :  { %v1691_v55 = vsel %vm159_vm2, %v1685_v50, 0.0  ;;  %v4546_v1 = vpack.c.bf16 %v1732_v0, %v1731_v12 }
 0xcc5   :  { %1692 = vadd.xlane.f32.xlu1 %v1691_v55  ;;  %v1688_v52 = vsel %vm159_vm2, %v1684_v51, 0.0 }
 0xcc6   :  { %1689 = vadd.xlane.f32.xlu0 %v1688_v52  ;;  %4547 = vmatprep.subr.bf16.mxu0 %v4546_v1 }
 0xcc7   :  { %4549 = vmatpush3.bf16.msra.mxu0 %v4546_v1 }
 0xcc8   :  { %4551 = vmatprep.subr.bf16.mxu0 %v4550_v4 }
 0xccb   :  { %4553 = vmatpush3.bf16.msra.mxu0 %v4550_v4 }
 0xd52   :  { %v1693_v54 = vpop.xlane.xlu1 %1692 }
 0xd53   :  { %v1696_v56 = vmul.f32 0.03125, %v1693_v54  ;;  %v1690_v57 = vpop.xlane.xlu0 %1689 }
 0xd54   :  { %v1695_v58 = vmul.f32 0.03125, %v1690_v57 }
 0xd55   :  { %v1698_v59 = vsub.f32 %v1685_v50, %v1696_v56 }
 0xd56   :  { %v1697_v60 = vsub.f32 %v1684_v51, %v1695_v58 }
 0xd57   :  { %v1700_v63 = vmul.f32 %v1698_v59, %v1698_v59 }
 0xd58   :  { %v1699_v61 = vmul.f32 %v1697_v60, %v1697_v60 }
 0xd59   :  { %v1704_v13 = vsel %vm159_vm2, %v1700_v63, 0.0 }
 0xd5a   :  { %v1701_v62 = vsel %vm159_vm2, %v1699_v61, 0.0 }
 0xd5b   :  { %1702 = vadd.xlane.f32.xlu0 %v1701_v62 }
 0xd5f   :  { %1705 = vadd.xlane.f32.xlu0 %v1704_v13 }
 0xde8   :  { %v1703_v5 = vpop.xlane.xlu0 %1702 }
 0xde9   :  { %v1707_v6 = vmul.f32 0.03125, %v1703_v5 }
 0xdeb   :  { %v1709_v7 = vadd.f32 1e-05, %v1707_v6 }
 0xdec   :  { %v1706_v8 = vpop.xlane.xlu0 %1705 }
 0xded   :  { %4665 = vrsqrt.f32 %v1709_v7  ;;  %v1708_v9 = vmul.f32 0.03125, %v1706_v8 }
 0xdef   :  { %v1710_v18 = vadd.f32 1e-05, %v1708_v9 }
 0xdf1   :  { %4667 = vrsqrt.f32 %v1710_v18 }
 0xdf7   :  { %v4666_v10 = vpop.eup %4665 }
 0xdf8   :  { %v1713_v15 = vmul.f32 %v4666_v10, %v1697_v60 }
 0xdfa   :  { %v1721_v17 = vmul.f32 %v4038_v11, %v1713_v15 }
 0xdfb   :  { %v4668_v20 = vpop.eup %4667 }
 0xdfc   :  { %v1714_v21 = vmul.f32 %v4668_v20, %v1698_v59  ;;  %v5066_v22 = vadd.f32 %v4039_v16, %v1721_v17 }
 0xdfe   :  { %v1722_v23 = vmul.f32 %v4038_v11, %v1714_v21  ;;  %4365 = vmatprep.mubr.msk.f32.mxu0 %vm159_vm2, %v5066_v22 }
 0xe00   :  { %v5070_v24 = vadd.f32 %v4039_v16, %v1722_v23 }
 0xe02   :  { %4366 = vmatmul.mubr.msk.f32.vlgmr.msra.gmra.mrb[22].mxu0 %vm159_vm2, %v5070_v24 }
 0xed5   :  { %v4367_v37 = vpop.f32.mrb[22].mxu0 }
 0xed6   :  { %v1820_v38 = vadd.f32 %v4367_v37, %v4040_v36  ;;  %v1814_v39 = vpop.f32.mrb[23].mxu0 }
 0xed7   :  { %v1815_v40 = vadd.f32 %v4040_v36, %v1814_v39  ;;  %v4045_v39 = vld [vmem:[%s5429_s12] ss:$0 sm:$0xff] }
 0xed8   :  { %v1826_v41 = vmul.f32 0.70710677, %v1820_v38  ;;  %v1824_v35 = vmul.f32 0.5, %v1820_v38 }
 0xed9   :  { %v1825_v42 = vmul.f32 0.70710677, %v1815_v40  ;;  %v1823_v33 = vmul.f32 0.5, %v1815_v40 }
 0xeda   :  { %v4044_v43 = vclamps-f32 %v1826_v41, 4.0 }
 0xedb   :  { %v4043_v44 = vclamps-f32 %v1825_v42, 4.0 }
 0xedc   :  { %v1832_v45 = vmul.f32 %v4044_v43, %v4044_v43 }
 0xedd   :  { %v1831_v53 = vmul.f32 %v4043_v44, %v4043_v44 }
 0xede   :  { %v1850_v46 = vmul.f32 -1.1791603e-07, %v1832_v45  ;;  %v1834_v47 = vmul.f32 0.00022905065, %v1832_v45 }
 0xedf   :  { %v1849_v48 = vmul.f32 -1.1791603e-07, %v1831_v53  ;;  %v1833_v50 = vmul.f32 0.00022905065, %v1831_v53 }
 0xee0   :  { %v1852_v49 = vadd.f32 2.3547966e-05, %v1850_v46  ;;  %v1836_v52 = vadd.f32 0.003408291, %v1834_v47 }
 0xee1   :  { %v1851_v51 = vadd.f32 2.3547966e-05, %v1849_v48  ;;  %v1835_v57 = vadd.f32 0.003408291, %v1833_v50 }
 0xee2   :  { %v1854_v55 = vmul.f32 %v1852_v49, %v1832_v45  ;;  %v1838_v60 = vmul.f32 %v1836_v52, %v1832_v45 }
 0xee3   :  { %v1853_v54 = vmul.f32 %v1851_v51, %v1831_v53  ;;  %v1837_v63 = vmul.f32 %v1835_v57, %v1831_v53 }
 0xee4   :  { %v1856_v56 = vadd.f32 0.0010179626, %v1854_v55  ;;  %v1840_v0 = vadd.f32 0.050955694, %v1838_v60 }
 0xee5   :  { %v1855_v58 = vadd.f32 0.0010179626, %v1853_v54  ;;  %v1839_v3 = vadd.f32 0.050955694, %v1837_v63 }
 0xee6   :  { %v1858_v59 = vmul.f32 %v1856_v56, %v1832_v45  ;;  %v1842_v6 = vmul.f32 %v1840_v0, %v1832_v45  ;;  %v4051_v56 = vld [vmem:[%s5419_s3 + $0x28] sm:$0xff] }
 0xee7   :  { %v1857_v61 = vmul.f32 %v1855_v58, %v1831_v53  ;;  %v1841_v9 = vmul.f32 %v1839_v3, %v1831_v53  ;;  %v4052_v58 = vld [vmem:[%s5419_s3 + $0x30] sm:$0xff] }
 0xee8   :  { %v1860_v62 = vadd.f32 0.01407047, %v1858_v59  ;;  %v1844_v11 = vadd.f32 0.18520832, %v1842_v6  ;;  %v4053_v59 = vld [vmem:[%s5419_s3 + $0x38] sm:$0xff] }
 0xee9   :  { %v1859_v13 = vadd.f32 0.01407047, %v1857_v61  ;;  %v1843_v17 = vadd.f32 0.18520832, %v1841_v9  ;;  %v4574_v60 = vpack.c.bf16 %v4053_v59, %v4052_v58  ;;  %v4049_v6 = vld [vmem:[%s5431_s14] ss:$0 sm:$0xff] }
 0xeea   :  { %v1862_v12 = vmul.f32 %v1860_v62, %v1832_v45  ;;  %v1846_v21 = vmul.f32 %v1844_v11, %v1832_v45 }
 0xeeb   :  { %v1861_v1 = vmul.f32 %v1859_v13, %v1831_v53  ;;  %v1845_v23 = vmul.f32 %v1843_v17, %v1831_v53 }
 0xeec   :  { %v1864_v2 = vadd.f32 0.11098505, %v1862_v12  ;;  %v1848_v19 = vadd.f32 1.1283791, %v1846_v21 }
 0xeed   :  { %v1863_v4 = vadd.f32 0.11098505, %v1861_v1  ;;  %v1847_v25 = vadd.f32 1.1283791, %v1845_v23 }
 0xeee   :  { %v1866_v5 = vmul.f32 %v1864_v2, %v1832_v45  ;;  %v1874_v26 = vmul.f32 %v4044_v43, %v1848_v19  ;;  %v4048_v2 = vld [vmem:[%s5430_s13] ss:$0 sm:$0xff] }
 0xeef   :  { %v1865_v7 = vmul.f32 %v1863_v4, %v1831_v53  ;;  %v1873_v28 = vmul.f32 %v4043_v44, %v1847_v25 }
 0xef0   :  { %v1868_v8 = vadd.f32 0.49746925, %v1866_v5 }
 0xef1   :  { %v1867_v18 = vadd.f32 0.49746925, %v1865_v7 }
 0xef2   :  { %v1870_v10 = vmul.f32 %v1868_v8, %v1832_v45 }
 0xef3   :  { %v1869_v15 = vmul.f32 %v1867_v18, %v1831_v53 }
 0xef4   :  { %v1872_v16 = vadd.f32 1.0, %v1870_v10  ;;  %v4055_v10 = vld [vmem:[%s5421_s4 + $0x1] ss:$0 sm:$0xff]  ;;  %s5452_s4 = smov 72  }
 0xef5   :  { %v1871_v20 = vadd.f32 1.0, %v1869_v15 }
 0xef6   :  { %4669 = vrcp.f32 %v1872_v16 }
 0xef7   :  { %4671 = vrcp.f32 %v1871_v20 }
 0xf00   :  { %v4670_v27 = vpop.eup %4669 }
 0xf01   :  { %v4672_v29 = vpop.eup %4671  ;;  %v1878_v30 = vmul.f32 %v4670_v27, %v1874_v26 }
 0xf02   :  { %v1876_v31 = vmul.f32 %v4672_v29, %v1873_v28 }
 0xf03   :  { %v1880_v32 = vadd.f32 1.0, %v1878_v30 }
 0xf04   :  { %v1879_v34 = vadd.f32 1.0, %v1876_v31 }
 0xf05   :  { %v1882_v37 = vmul.f32 %v1880_v32, %v1824_v35 }
 0xf06   :  { %v1881_v36 = vmul.f32 %v1879_v34, %v1823_v33 }
 0xf08   :  { %4384 = vmatprep.mubr.msk.f32.mxu1 %vm1898_vm7, %v1881_v36 }
 0xf09   :  { %4385 = vmatmul.mubr.msk.f32.vlgmr.msra.gmra.mrb[16].mxu1 %vm1898_vm7, %v1882_v37 }
 0xf0a   :  { %4410 = vmatprep.mubr.msk.f32.mxu1 %vm4722_vm3, %v4721_v14 }
 0xfdc   :  { %v4386_v41 = vpop.f32.mrb[16].mxu1 }
 0xfdd   :  { %v1977_v42 = vadd.f32 %v4386_v41, %v4045_v39  ;;  %v1971_v43 = vpop.f32.mrb[17].mxu1 }
 0xfde   :  { %v1972_v40 = vadd.f32 %v4045_v39, %v1971_v43 }
 0xfdf   :  { %v1981_v38 = vadd.f32 %v1977_v42, %v5070_v24 }
 0xfe0   :  { %v1980_v44 = vadd.f32 %v1972_v40, %v5066_v22  ;;  %v4050_v22 = vld [vmem:[%s5419_s3 + $0x20] sm:$0xff] }
 0xfe1   :  { %v1987_v45 = vsel %vm159_vm2, %v1981_v38, 0.0  ;;  %v4570_v57 = vpack.c.bf16 %v4051_v56, %v4050_v22 }
 0xfe2   :  { %1988 = vadd.xlane.f32.xlu0 %v1987_v45  ;;  %v1984_v53 = vsel %vm159_vm2, %v1980_v44, 0.0 }
 0xfe3   :  { %1985 = vadd.xlane.f32.xlu1 %v1984_v53  ;;  %4571 = vmatprep.subr.bf16.mxu0 %v4570_v57 }
 0xfe4   :  { %4573 = vmatpush3.bf16.msra.mxu0 %v4570_v57 }
 0xfe5   :  { %4575 = vmatprep.subr.bf16.mxu0 %v4574_v60 }
 0xfe8   :  { %4577 = vmatpush3.bf16.msra.mxu0 %v4574_v60 }
 0xfe9   :  { %4398 = vmatprep.subr.mxu0 %v4721_v14 }
0x106f   :  { %v1989_v46 = vpop.xlane.xlu0 %1988 }
0x1070   :  { %v1991_v47 = vmul.f32 0.03125, %v1989_v46  ;;  %v1986_v48 = vpop.xlane.xlu1 %1985 }
0x1071   :  { %v1990_v49 = vmul.f32 0.03125, %v1986_v48 }
0x1072   :  { %v1993_v50 = vsub.f32 %v1981_v38, %v1991_v47 }
0x1073   :  { %v1992_v51 = vsub.f32 %v1980_v44, %v1990_v49 }
0x1074   :  { %v1995_v55 = vmul.f32 %v1993_v50, %v1993_v50 }
0x1075   :  { %v1994_v52 = vmul.f32 %v1992_v51, %v1992_v51 }
0x1076   :  { %v1999_v54 = vsel %vm159_vm2, %v1995_v55, 0.0 }
0x1077   :  { %2000 = vadd.xlane.f32.xlu0 %v1999_v54  ;;  %v1996_v24 = vsel %vm159_vm2, %v1994_v52, 0.0 }
0x1078   :  { %1997 = vadd.xlane.f32.xlu1 %v1996_v24 }
0x1104   :  { %v2001_v61 = vpop.xlane.xlu0 %2000 }
0x1105   :  { %v2003_v62 = vmul.f32 0.03125, %v2001_v61  ;;  %v1998_v63 = vpop.xlane.xlu1 %1997 }
0x1106   :  { %v2002_v13 = vmul.f32 0.03125, %v1998_v63 }
0x1107   :  { %v2005_v12 = vadd.f32 1e-05, %v2003_v62 }
0x1108   :  { %v2004_v0 = vadd.f32 1e-05, %v2002_v13 }
0x1109   :  { %4673 = vrsqrt.f32 %v2005_v12 }
0x110a   :  { %4675 = vrsqrt.f32 %v2004_v0 }
0x1113   :  { %v4674_v1 = vpop.eup %4673 }
0x1114   :  { %v4676_v3 = vpop.eup %4675  ;;  %v2009_v4 = vmul.f32 %v4674_v1, %v1993_v50 }
0x1115   :  { %v2008_v5 = vmul.f32 %v4676_v3, %v1992_v51 }
0x1116   :  { %v2017_v7 = vmul.f32 %v4048_v2, %v2009_v4 }
0x1117   :  { %v2016_v8 = vmul.f32 %v4048_v2, %v2008_v5 }
0x1118   :  { %v5136_v18 = vadd.f32 %v4049_v6, %v2017_v7 }
0x1119   :  { %v5134_v9 = vadd.f32 %v4049_v6, %v2016_v8 }
0x111b   :  { %4395 = vmatprep.mubr.msk.f32.mxu0 %vm159_vm2, %v5134_v9 }
0x111c   :  { %4396 = vmatmul.mubr.msk.f32.vlgmr.msra.gmra.mrb[24].mxu0 %vm159_vm2, %v5136_v18 }
0x111d   :  { %4400 = vmatprep.mubr.msk.f32.mxu0 %vm4722_vm3, %v4721_v14 }
0x11ef   :  { %v4397_v11 = vpop.f32.mrb[24].mxu0 }
0x11f0   :  { %v5147_v15 = vadd.f32 %v4397_v11, %v4055_v10  ;;  %v2111_v16 = vpop.f32.mrb[25].mxu0 }
0x11f1   :  { %v5149_v17 = vadd.f32 %v4055_v10, %v2111_v16 }
0x11f2   :  { %2198 = vrot.lane.b32.xlu0 %v5147_v15, %s4723_s28 }
0x11f3   :  { %2121 = vrot.lane.b32.xlu1 %v5149_v17, %s4723_s28  ;;  %s5453_s28 = smov 104  }
0x1264   :  { %v2199_v21 = vpop.permute.xlu0 %2198 }
0x1265   :  { %v2122_v20 = vpop.permute.xlu1 %2121 }
0x1266   :  { %4399 = vmatpush3.xpose.msk.msra.mxu0 %vm244_vm4, %v2122_v20 }
0x1267   :  { %4403 = vmatprep.subr.mxu0 %v4721_v14 }
0x1269   :  { %4401 = vmatmul.mubr.msk.f32.vlgmr.msra.gmra.mrb[26].mxu0 %vm244_vm4, %v5149_v17 }
0x126a   :  { %4404 = vmatpush3.xpose.msk.msra.mxu0 %vm244_vm4, %v2199_v21  ;;  %4405 = vmatprep.mubr.msk.f32.mxu0 %vm4722_vm3, %v4721_v14 }
0x126b   :  { %4413 = vmatprep.subr.mxu0 %v4721_v14 }
0x126d   :  { %4406 = vmatmul.mubr.msk.f32.vlgmr.msra.gmra.mrb[28].mxu0 %vm244_vm4, %v5147_v15 }
0x126e   :  { %4415 = vmatprep.mubr.msk.f32.mxu0 %vm4722_vm3, %v4721_v14 }
0x133c   :  { %v2193_v23 = vpop.f32.mrb[26].mxu0 }
0x133d   :  { %v4402_v19 = vpop.f32.mrb[27].mxu0  ;;  %v2274_v25 = vsel %vm244_vm4, %v2193_v23, -inf }
0x133e   :  { %2275 = vmax.xlane.f32.xlu1 %v2274_v25 }
0x1340   :  { %v2270_v26 = vpop.f32.mrb[28].mxu0 }
0x1341   :  { %v4407_v27 = vpop.f32.mrb[29].mxu0  ;;  %v2277_v28 = vsel %vm244_vm4, %v2270_v26, -inf }
0x1342   :  { %2278 = vmax.xlane.f32.xlu0 %v2277_v28 }
0x134f   :  { %2296 = vrot.lane.b32.xlu1 %v5149_v17, %s4724_s29 }
0x1353   :  { %2450 = vrot.lane.b32.xlu1 %v5149_v17, %s4725_s1 }
0x1357   :  { %2528 = vrot.lane.b32.xlu1 %v5147_v15, %s4725_s1  ;;  %s5455_s1 = smov 8  }
0x1358   :  { %2372 = vrot.lane.b32.xlu0 %v5147_v15, %s4724_s29  ;;  %s5454_s29 = smov 40  }
0x13cb   :  { %v2276_v29 = vpop.xlane.xlu1 %2275 }
0x13cc   :  { %v2280_v30 = vsub.f32 %v2193_v23, %v2276_v29 }
0x13ce   :  { %v2282_v31 = vmul.f32 1.442695, %v2280_v30 }
0x13cf   :  { %v2297_v32 = vpop.permute.xlu1 %2296  ;;  %v2279_v33 = vpop.xlane.xlu0 %2278 }
0x13d0   :  { %4677 = vpow2.f32 %v2282_v31  ;;  %v2281_v34 = vsub.f32 %v2270_v26, %v2279_v33  ;;  %4409 = vmatpush3.msra.mxu1 %v2297_v32 }
0x13d1   :  { %4418 = vmatprep.subr.mxu1 %v4721_v14 }
0x13d2   :  { %v2284_v35 = vmul.f32 1.442695, %v2281_v34 }
0x13d3   :  { %v2373_v36 = vpop.permute.xlu0 %2372  ;;  %v2451_v43 = vpop.permute.xlu1 %2450 }
0x13d4   :  { %4679 = vpow2.f32 %v2284_v35  ;;  %4414 = vmatpush3.msra.mxu0 %v2373_v36 }
0x13d5   :  { %4423 = vmatprep.subr.mxu0 %v4721_v14 }
0x13d7   :  { %v2529_v40 = vpop.permute.xlu1 %2528 }
0x13da   :  { %v4678_v37 = vpop.eup %4677 }
0x13db   :  { %v2286_v39 = vsel %vm244_vm4, %v4678_v37, 0.0 }
0x13dc   :  { %2287 = vadd.xlane.f32.xlu1 %v2286_v39 }
0x13de   :  { %v4680_v41 = vpop.eup %4679 }
0x13df   :  { %v2289_v42 = vsel %vm244_vm4, %v4680_v41, 0.0 }
0x13e0   :  { %2290 = vadd.xlane.f32.xlu0 %v2289_v42 }
0x13ed   :  { %2526 = vrot.lane.b32.xlu1 %v5147_v15, %s4726_s30 }
0x13f6   :  { %2448 = vrot.lane.b32.xlu0 %v5149_v17, %s4726_s30  ;;  %s5456_s30 = smov 16  }
0x1469   :  { %v2288_v38 = vpop.xlane.xlu1 %2287 }
0x146a   :  { %4681 = vrcp.f32 %v2288_v38 }
0x146d   :  { %v2291_v44 = vpop.xlane.xlu0 %2290  ;;  %v2527_v49 = vpop.permute.xlu1 %2526 }
0x146e   :  { %4683 = vrcp.f32 %v2291_v44 }
0x1471   :  { %v2449_v48 = vpop.permute.xlu0 %2448 }
0x1474   :  { %v4682_v45 = vpop.eup %4681 }
0x1475   :  { %v2293_v53 = vmul.f32 %v4682_v45, %v4678_v37 }
0x1477   :  { %4411 = vmatmul.mubr.msk.f32.vlgmr.msra.gmra.mrb[18].mxu1 %vm244_vm4, %v2293_v53 }
0x1478   :  { %v4684_v46 = vpop.eup %4683  ;;  %4419 = vmatpush3.xpose.msk.msra.mxu1 %vm244_vm4, %v2451_v43  ;;  %4420 = vmatprep.mubr.msk.f32.mxu1 %vm4722_vm3, %v4721_v14 }
0x1479   :  { %v2295_v47 = vmul.f32 %v4684_v46, %v4680_v41  ;;  %4428 = vmatprep.subr.mxu1 %v4721_v14 }
0x147b   :  { %4416 = vmatmul.mubr.msk.f32.vlgmr.msra.gmra.mrb[30].mxu0 %vm244_vm4, %v2295_v47  ;;  %4421 = vmatmul.mubr.msk.f32.vlgmr.msra.gmra.mrb[20].mxu1 %vm244_vm4, %v2449_v48 }
0x147c   :  { %4424 = vmatpush3.xpose.msk.msra.mxu0 %vm244_vm4, %v2529_v40  ;;  %4425 = vmatprep.mubr.msk.f32.mxu0 %vm4722_vm3, %v4721_v14 }
0x147d   :  { %4433 = vmatprep.subr.mxu0 %v4721_v14  ;;  %4430 = vmatprep.mubr.msk.f32.mxu1 %vm4722_vm3, %v4721_v14 }
0x147f   :  { %4426 = vmatmul.mubr.msk.f32.vlgmr.msra.gmra.mrb[32].mxu0 %vm244_vm4, %v2527_v49 }
0x1480   :  { %4435 = vmatprep.mubr.msk.f32.mxu0 %vm4722_vm3, %v4721_v14 }
0x154a   :  { %v5201_v50 = vpop.f32.mrb[18].mxu1 }
0x154b   :  { %v4412_v51 = vpop.f32.mrb[19].mxu1 }
0x154e   :  { %v5203_v55 = vpop.f32.mrb[30].mxu0  ;;  %v2522_v52 = vpop.f32.mrb[20].mxu1 }
0x154f   :  { %v4417_v54 = vpop.f32.mrb[31].mxu0  ;;  %v4422_v24 = vpop.f32.mrb[21].mxu1  ;;  %v2604_v22 = vsel %vm244_vm4, %v2522_v52, -inf }
0x1550   :  { %2605 = vmax.xlane.f32.xlu0 %v2604_v22 }
0x1552   :  { %v2600_v56 = vpop.f32.mrb[32].mxu0 }
0x1553   :  { %v4427_v57 = vpop.f32.mrb[33].mxu0  ;;  %v2607_v58 = vsel %vm244_vm4, %v2600_v56, -inf }
0x1554   :  { %2608 = vmax.xlane.f32.xlu1 %v2607_v58 }
0x1565   :  { %2626 = vrot.lane.b32.xlu1 %v5149_v17, %s4727_s18 }
0x1566   :  { %2702 = vrot.lane.b32.xlu0 %v5147_v15, %s4727_s18 }
0x1569   :  { %2780 = vrot.lane.b32.xlu1 %v5149_v17, %s4729_s0 }
0x156d   :  { %2858 = vrot.lane.b32.xlu1 %v5147_v15, %s4729_s0 }
0x1571   :  { %2856 = vrot.lane.b32.xlu1 %v5147_v15, %s4728_s19 }
0x15dd   :  { %v2606_v59 = vpop.xlane.xlu0 %2605 }
0x15de   :  { %v2610_v60 = vsub.f32 %v2522_v52, %v2606_v59 }
0x15e0   :  { %v2612_v61 = vmul.f32 1.442695, %v2610_v60 }
0x15e1   :  { %v2703_v62 = vpop.permute.xlu0 %2702  ;;  %v2609_v63 = vpop.xlane.xlu1 %2608 }
0x15e2   :  { %4685 = vpow2.f32 %v2612_v61  ;;  %v2611_v13 = vsub.f32 %v2600_v56, %v2609_v63  ;;  %4434 = vmatpush3.msra.mxu0 %v2703_v62 }
0x15e3   :  { %4443 = vmatprep.subr.mxu0 %v4721_v14 }
0x15e4   :  { %v2614_v12 = vmul.f32 1.442695, %v2611_v13 }
0x15e5   :  { %v2627_v0 = vpop.permute.xlu1 %2626 }
0x15e6   :  { %4687 = vpow2.f32 %v2614_v12  ;;  %4429 = vmatpush3.msra.mxu1 %v2627_v0 }
0x15e7   :  { %4438 = vmatprep.subr.mxu1 %v4721_v14 }
0x15e9   :  { %v2781_v7 = vpop.permute.xlu1 %2780 }
0x15ec   :  { %v4686_v1 = vpop.eup %4685 }
0x15ed   :  { %v2616_v2 = vsel %vm244_vm4, %v4686_v1, 0.0  ;;  %v2859_v16 = vpop.permute.xlu1 %2858 }
0x15ee   :  { %2617 = vadd.xlane.f32.xlu0 %v2616_v2 }
0x15f0   :  { %v4688_v3 = vpop.eup %4687 }
0x15f1   :  { %v2619_v4 = vsel %vm244_vm4, %v4688_v3, 0.0  ;;  %v2857_v23 = vpop.permute.xlu1 %2856 }
0x15f2   :  { %2620 = vadd.xlane.f32.xlu0 %v2619_v4 }
0x1608   :  { %2778 = vrot.lane.b32.xlu0 %v5149_v17, %s4728_s19 }
0x167b   :  { %v2618_v5 = vpop.xlane.xlu0 %2617 }
0x167c   :  { %4689 = vrcp.f32 %v2618_v5 }
0x167f   :  { %v2621_v6 = vpop.xlane.xlu0 %2620 }
0x1680   :  { %4691 = vrcp.f32 %v2621_v6 }
0x1683   :  { %v2779_v21 = vpop.permute.xlu0 %2778 }
0x1686   :  { %v4690_v8 = vpop.eup %4689 }
0x1687   :  { %v2623_v10 = vmul.f32 %v4690_v8, %v4686_v1 }
0x1689   :  { %4431 = vmatmul.mubr.msk.f32.vlgmr.msra.gmra.mrb[22].mxu1 %vm244_vm4, %v2623_v10 }
0x168a   :  { %v4692_v11 = vpop.eup %4691  ;;  %4439 = vmatpush3.xpose.msk.msra.mxu1 %vm244_vm4, %v2781_v7  ;;  %4440 = vmatprep.mubr.msk.f32.mxu1 %vm4722_vm3, %v4721_v14 }
0x168b   :  { %v2625_v20 = vmul.f32 %v4692_v11, %v4688_v3  ;;  %4448 = vmatprep.subr.mxu1 %v4721_v14 }
0x168d   :  { %4436 = vmatmul.mubr.msk.f32.vlgmr.msra.gmra.mrb[34].mxu0 %vm244_vm4, %v2625_v20  ;;  %4441 = vmatmul.mubr.msk.f32.vlgmr.msra.gmra.mrb[24].mxu1 %vm244_vm4, %v2779_v21 }
0x168e   :  { %4444 = vmatpush3.xpose.msk.msra.mxu0 %vm244_vm4, %v2859_v16  ;;  %4445 = vmatprep.mubr.msk.f32.mxu0 %vm4722_vm3, %v4721_v14 }
0x168f   :  { %4453 = vmatprep.subr.mxu0 %v4721_v14  ;;  %4450 = vmatprep.mubr.msk.f32.mxu1 %vm4722_vm3, %v4721_v14 }
0x1691   :  { %4446 = vmatmul.mubr.msk.f32.vlgmr.msra.gmra.mrb[36].mxu0 %vm244_vm4, %v2857_v23 }
0x1692   :  { %4455 = vmatprep.mubr.msk.f32.mxu0 %vm4722_vm3, %v4721_v14 }
0x175c   :  { %v5239_v19 = vpop.f32.mrb[22].mxu1 }
0x175d   :  { %v4432_v25 = vpop.f32.mrb[23].mxu1 }
0x1760   :  { %v5241_v26 = vpop.f32.mrb[34].mxu0  ;;  %v2852_v27 = vpop.f32.mrb[24].mxu1 }
0x1761   :  { %v4437_v28 = vpop.f32.mrb[35].mxu0  ;;  %v4442_v29 = vpop.f32.mrb[25].mxu1  ;;  %v2934_v30 = vsel %vm244_vm4, %v2852_v27, -inf }
0x1762   :  { %2935 = vmax.xlane.f32.xlu0 %v2934_v30  ;;  %v4084_v28 = vld [vmem:[%s5422_s5 + $0x30] sm:$0xff]  ;;  %v4085_v29 = vld [vmem:[%s5422_s5 + $0x38] sm:$0xff] }
0x1763   :  { %v4582_v30 = vpack.c.bf16 %v4085_v29, %v4084_v28  ;;  %v4106_v28 = vld [vmem:[%s5427_s11 + $0x50] sm:$0xff]  ;;  %v4107_v29 = vld [vmem:[%s5427_s11 + $0x58] sm:$0xff] }
0x1764   :  { %v2930_v31 = vpop.f32.mrb[36].mxu0 }
0x1765   :  { %v4447_v32 = vpop.f32.mrb[37].mxu0  ;;  %v2937_v33 = vsel %vm244_vm4, %v2930_v31, -inf }
0x1766   :  { %2938 = vmax.xlane.f32.xlu1 %v2937_v33 }
0x1777   :  { %2956 = vrot.lane.b32.xlu1 %v5149_v17, %s4730_s20 }
0x1778   :  { %3032 = vrot.lane.b32.xlu0 %v5147_v15, %s4730_s20 }
0x177b   :  { %3110 = vrot.lane.b32.xlu1 %v5149_v17, %s5452_s4 }
0x177f   :  { %3188 = vrot.lane.b32.xlu1 %v5147_v15, %s5452_s4 }
0x1783   :  { %3186 = vrot.lane.b32.xlu1 %v5147_v15, %s5453_s28 }
0x17ef   :  { %v2936_v34 = vpop.xlane.xlu0 %2935 }
0x17f0   :  { %v2940_v35 = vsub.f32 %v2852_v27, %v2936_v34 }
0x17f2   :  { %v2942_v36 = vmul.f32 1.442695, %v2940_v35 }
0x17f3   :  { %v3033_v37 = vpop.permute.xlu0 %3032  ;;  %v2939_v39 = vpop.xlane.xlu1 %2938 }
0x17f4   :  { %4693 = vpow2.f32 %v2942_v36  ;;  %v2941_v41 = vsub.f32 %v2930_v31, %v2939_v39  ;;  %4454 = vmatpush3.msra.mxu0 %v3033_v37 }
0x17f5   :  { %4463 = vmatprep.subr.mxu0 %v4721_v14 }
0x17f6   :  { %v2944_v42 = vmul.f32 1.442695, %v2941_v41 }
0x17f7   :  { %v2957_v43 = vpop.permute.xlu1 %2956 }
0x17f8   :  { %4695 = vpow2.f32 %v2944_v42  ;;  %4449 = vmatpush3.msra.mxu1 %v2957_v43 }
0x17f9   :  { %4458 = vmatprep.subr.mxu1 %v4721_v14 }
0x17fb   :  { %v3111_v47 = vpop.permute.xlu1 %3110 }
0x17fe   :  { %v4694_v40 = vpop.eup %4693 }
0x17ff   :  { %v2946_v38 = vsel %vm244_vm4, %v4694_v40, 0.0  ;;  %v3189_v52 = vpop.permute.xlu1 %3188 }
0x1800   :  { %2947 = vadd.xlane.f32.xlu0 %v2946_v38 }
0x1802   :  { %v4696_v44 = vpop.eup %4695 }
0x1803   :  { %v2949_v45 = vsel %vm244_vm4, %v4696_v44, 0.0  ;;  %v3187_v22 = vpop.permute.xlu1 %3186 }
0x1804   :  { %2950 = vadd.xlane.f32.xlu0 %v2949_v45 }
0x181a   :  { %3108 = vrot.lane.b32.xlu0 %v5149_v17, %s5453_s28 }
0x188d   :  { %v2948_v53 = vpop.xlane.xlu0 %2947 }
0x188e   :  { %4697 = vrcp.f32 %v2948_v53 }
0x1891   :  { %v2951_v46 = vpop.xlane.xlu0 %2950 }
0x1892   :  { %4699 = vrcp.f32 %v2951_v46 }
0x1895   :  { %v3109_v24 = vpop.permute.xlu0 %3108 }
0x1898   :  { %v4698_v48 = vpop.eup %4697 }
0x1899   :  { %v2953_v49 = vmul.f32 %v4698_v48, %v4694_v40 }
0x189b   :  { %4451 = vmatmul.mubr.msk.f32.vlgmr.msra.gmra.mrb[26].mxu1 %vm244_vm4, %v2953_v49 }
0x189c   :  { %v4700_v51 = vpop.eup %4699  ;;  %4459 = vmatpush3.xpose.msk.msra.mxu1 %vm244_vm4, %v3111_v47  ;;  %4460 = vmatprep.mubr.msk.f32.mxu1 %vm4722_vm3, %v4721_v14 }
0x189d   :  { %v2955_v54 = vmul.f32 %v4700_v51, %v4696_v44  ;;  %4468 = vmatprep.subr.mxu1 %v4721_v14 }
0x189f   :  { %4456 = vmatmul.mubr.msk.f32.vlgmr.msra.gmra.mrb[38].mxu0 %vm244_vm4, %v2955_v54  ;;  %4461 = vmatmul.mubr.msk.f32.vlgmr.msra.gmra.mrb[28].mxu1 %vm244_vm4, %v3109_v24 }
0x18a0   :  { %4464 = vmatpush3.xpose.msk.msra.mxu0 %vm244_vm4, %v3189_v52  ;;  %4465 = vmatprep.mubr.msk.f32.mxu0 %vm4722_vm3, %v4721_v14 }
0x18a1   :  { %4473 = vmatprep.subr.mxu0 %v4721_v14  ;;  %4470 = vmatprep.mubr.msk.f32.mxu1 %vm4722_vm3, %v4721_v14 }
0x18a3   :  { %4466 = vmatmul.mubr.msk.f32.vlgmr.msra.gmra.mrb[40].mxu0 %vm244_vm4, %v3187_v22 }
0x18a4   :  { %4475 = vmatprep.mubr.msk.f32.mxu0 %vm4722_vm3, %v4721_v14 }
0x196e   :  { %v3028_v56 = vpop.f32.mrb[26].mxu1 }
0x196f   :  { %v4452_v57 = vpop.f32.mrb[27].mxu1 }
0x1972   :  { %v3104_v58 = vpop.f32.mrb[38].mxu0  ;;  %v3182_v59 = vpop.f32.mrb[28].mxu1 }
0x1973   :  { %v4457_v60 = vpop.f32.mrb[39].mxu0  ;;  %v4462_v61 = vpop.f32.mrb[29].mxu1  ;;  %v3264_v62 = vsel %vm244_vm4, %v3182_v59, -inf }
0x1974   :  { %3265 = vmax.xlane.f32.xlu0 %v3264_v62 }
0x1976   :  { %v3260_v63 = vpop.f32.mrb[40].mxu0 }
0x1977   :  { %v4467_v13 = vpop.f32.mrb[41].mxu0  ;;  %v3267_v12 = vsel %vm244_vm4, %v3260_v63, -inf }
0x1978   :  { %3268 = vmax.xlane.f32.xlu1 %v3267_v12  ;;  %v4096_v12 = vld [vmem:[%s5424_s9 + $0x30] sm:$0xff] }
0x1989   :  { %3286 = vrot.lane.b32.xlu1 %v5149_v17, %s5454_s29 }
0x198d   :  { %3440 = vrot.lane.b32.xlu1 %v5239_v19, %s5455_s1 }
0x1991   :  { %3442 = vrot.lane.b32.xlu1 %v5241_v26, %s5455_s1  ;;  %v4083_v26 = vld [vmem:[%s5422_s5 + $0x28] sm:$0xff] }
0x1995   :  { %3450 = vrot.lane.b32.xlu1 %v3104_v58, %s5456_s30 }
0x1a01   :  { %v3266_v0 = vpop.xlane.xlu0 %3265 }
0x1a02   :  { %v3270_v1 = vsub.f32 %v3182_v59, %v3266_v0  ;;  %v4097_v0 = vld [vmem:[%s5424_s9 + $0x38] sm:$0xff] }
0x1a04   :  { %v3272_v2 = vmul.f32 1.442695, %v3270_v1  ;;  %v4590_v1 = vpack.c.bf16 %v4097_v0, %v4096_v12 }
0x1a05   :  { %v3269_v3 = vpop.xlane.xlu1 %3268 }
0x1a06   :  { %4701 = vpow2.f32 %v3272_v2  ;;  %v3271_v4 = vsub.f32 %v3260_v63, %v3269_v3  ;;  %v4095_v63 = vld [vmem:[%s5424_s9 + $0x28] sm:$0xff] }
0x1a08   :  { %v3274_v5 = vmul.f32 1.442695, %v3271_v4 }
0x1a09   :  { %v3287_v6 = vpop.permute.xlu1 %3286 }
0x1a0a   :  { %4703 = vpow2.f32 %v3274_v5  ;;  %4469 = vmatpush3.msra.mxu1 %v3287_v6 }
0x1a0d   :  { %v3441_v35 = vpop.permute.xlu1 %3440 }
0x1a0e   :  { %v3462_v39 = vsel %vm244_vm4, %v5201_v50, %v3441_v35  ;;  %v4087_v50 = vld [vmem:[%s5423_s6 + $0x1] ss:$0 sm:$0xff] }
0x1a10   :  { %v4702_v7 = vpop.eup %4701 }
0x1a11   :  { %v3276_v17 = vsel %vm244_vm4, %v4702_v7, 0.0  ;;  %v3443_v36 = vpop.permute.xlu1 %3442 }
0x1a12   :  { %3277 = vadd.xlane.f32.xlu0 %v3276_v17  ;;  %v3463_v38 = vsel %vm244_vm4, %v5203_v55, %v3443_v36  ;;  %v4099_v36 = vld [vmem:[%s5428_s10 + $0x1] ss:$0 sm:$0xff] }
0x1a14   :  { %v4704_v8 = vpop.eup %4703 }
0x1a15   :  { %v3279_v10 = vsel %vm244_vm4, %v4704_v8, 0.0  ;;  %v3451_v41 = vpop.permute.xlu1 %3450 }
0x1a16   :  { %3280 = vadd.xlane.f32.xlu0 %v3279_v10  ;;  %v3465_v44 = vsel %vm1586_vm6, %v3463_v38, %v3451_v41 }
0x1a2c   :  { %3362 = vrot.lane.b32.xlu0 %v5147_v15, %s5454_s29  ;;  %v4082_v15 = vld [vmem:[%s5422_s5 + $0x20] sm:$0xff] }
0x1a2d   :  { %v4578_v27 = vpack.c.bf16 %v4083_v26, %v4082_v15  ;;  %v4104_v15 = vld [vmem:[%s5427_s11 + $0x40] sm:$0xff]  ;;  %v4105_v26 = vld [vmem:[%s5427_s11 + $0x48] sm:$0xff] }
0x1a2f   :  { %4579 = vmatprep.subr.bf16.mxu1 %v4578_v27 }
0x1a30   :  { %3448 = vrot.lane.b32.xlu0 %v3028_v56, %s5456_s30 }
0x1a9f   :  { %v3278_v11 = vpop.xlane.xlu0 %3277 }
0x1aa0   :  { %4705 = vrcp.f32 %v3278_v11  ;;  %v4093_v11 = vld [vmem:[%s5426_s8 + $0x1] ss:$0 sm:$0xff] }
0x1aa3   :  { %v3281_v16 = vpop.xlane.xlu0 %3280 }
0x1aa4   :  { %4707 = vrcp.f32 %v3281_v16 }
0x1aa7   :  { %v3363_v20 = vpop.permute.xlu0 %3362 }
0x1aa8   :  { %4474 = vmatpush3.msra.mxu0 %v3363_v20 }
0x1aaa   :  { %v4706_v21 = vpop.eup %4705 }
0x1aab   :  { %v3283_v23 = vmul.f32 %v4706_v21, %v4702_v7  ;;  %v3449_v37 = vpop.permute.xlu0 %3448 }
0x1aac   :  { %v3464_v42 = vsel %vm1586_vm6, %v3462_v39, %v3449_v37 }
0x1aad   :  { %4471 = vmatmul.mubr.msk.f32.vlgmr.msra.gmra.mrb[30].mxu1 %vm244_vm4, %v3283_v23 }
0x1aae   :  { %v4708_v19 = vpop.eup %4707  ;;  %4581 = vmatpush3.bf16.msra.mxu1 %v4578_v27  ;;  %v4594_v27 = vpack.c.bf16 %v4105_v26, %v4104_v15 }
0x1aaf   :  { %v3285_v25 = vmul.f32 %v4708_v19, %v4704_v8  ;;  %4583 = vmatprep.subr.bf16.mxu1 %v4582_v30  ;;  %v4092_v8 = vld [vmem:[%s5425_s7 + $0x1] ss:$0 sm:$0xff] }
0x1ab1   :  { %4476 = vmatmul.mubr.msk.f32.vlgmr.msra.gmra.mrb[42].mxu0 %vm244_vm4, %v3285_v25 }
0x1ab2   :  { %4585 = vmatpush3.bf16.msra.mxu1 %v4582_v30  ;;  %v4108_v30 = vld [vmem:[%s5427_s11 + $0x60] sm:$0xff] }
0x1ab3   :  { %4595 = vmatprep.subr.bf16.mxu1 %v4594_v27 }
0x1b80   :  { %v3358_v31 = vpop.f32.mrb[30].mxu1 }
0x1b81   :  { %3456 = vrot.lane.b32.xlu0 %v3358_v31, %s5457_s24  ;;  %v4472_v32 = vpop.f32.mrb[31].mxu1  ;;  %v4109_v31 = vld [vmem:[%s5427_s11 + $0x68] sm:$0xff] }
0x1b82   :  { %v4602_v32 = vpack.c.bf16 %v4109_v31, %v4108_v30 }
0x1b84   :  { %v3434_v33 = vpop.f32.mrb[42].mxu0 }
0x1b85   :  { %3458 = vrot.lane.b32.xlu1 %v3434_v33, %s5457_s24  ;;  %v4477_v34 = vpop.f32.mrb[43].mxu0  ;;  %v4110_v33 = vld [vmem:[%s5427_s11 + $0x70] sm:$0xff] }
0x1b86   :  { %v4111_v34 = vld [vmem:[%s5427_s11 + $0x78] sm:$0xff] }
0x1b87   :  { %v4606_v35 = vpack.c.bf16 %v4111_v34, %v4110_v33 }
0x1bf3   :  { %v3457_v43 = vpop.permute.xlu0 %3456 }
0x1bf4   :  { %v3466_v40 = vsel %vm1589_vm5, %v3464_v42, %v3457_v43 }
0x1bf5   :  { %4486 = vmatprep.mubr.msk.f32.mxu1 %vm159_vm2, %v3466_v40 }
0x1bf7   :  { %v3459_v45 = vpop.permute.xlu1 %3458 }
0x1bf8   :  { %v3467_v53 = vsel %vm1589_vm5, %v3465_v44, %v3459_v45 }
0x1bf9   :  { %4487 = vmatmul.mubr.msk.f32.vlgmr.msra.gmra.mrb[32].mxu1 %vm159_vm2, %v3467_v53 }
0x1bfa   :  { %4597 = vmatpush3.bf16.msra.mxu1 %v4594_v27 }
0x1ccc   :  { %v4488_v46 = vpop.f32.mrb[32].mxu1 }
0x1ccd   :  { %v3559_v47 = vadd.f32 %v4488_v46, %v4087_v50  ;;  %v3553_v48 = vpop.f32.mrb[33].mxu1 }
0x1cce   :  { %v3554_v49 = vadd.f32 %v4087_v50, %v3553_v48 }
0x1ccf   :  { %v3563_v51 = vadd.f32 %v3559_v47, %v5136_v18 }
0x1cd0   :  { %v3562_v52 = vadd.f32 %v3554_v49, %v5134_v9  ;;  %v4094_v9 = vld [vmem:[%s5424_s9 + $0x20] sm:$0xff] }
0x1cd1   :  { %v3571_v55 = vsel %vm159_vm2, %v3563_v51, 0.0  ;;  %v4586_v13 = vpack.c.bf16 %v4095_v63, %v4094_v9 }
0x1cd2   :  { %3572 = vadd.xlane.f32.xlu1 %v3571_v55  ;;  %v3568_v54 = vsel %vm159_vm2, %v3562_v52, 0.0 }
0x1cd3   :  { %3569 = vadd.xlane.f32.xlu0 %v3568_v54  ;;  %4587 = vmatprep.subr.bf16.mxu0 %v4586_v13 }
0x1cd4   :  { %4589 = vmatpush3.bf16.msra.mxu0 %v4586_v13 }
0x1cd5   :  { %4591 = vmatprep.subr.bf16.mxu0 %v4590_v1 }
0x1cd8   :  { %4593 = vmatpush3.bf16.msra.mxu0 %v4590_v1 }
0x1d5f   :  { %v3573_v24 = vpop.xlane.xlu1 %3572 }
0x1d60   :  { %v3575_v22 = vmul.f32 0.03125, %v3573_v24  ;;  %v3570_v56 = vpop.xlane.xlu0 %3569 }
0x1d61   :  { %v3574_v57 = vmul.f32 0.03125, %v3570_v56 }
0x1d62   :  { %v3577_v58 = vsub.f32 %v3563_v51, %v3575_v22 }
0x1d63   :  { %v3576_v59 = vsub.f32 %v3562_v52, %v3574_v57 }
0x1d64   :  { %v3579_v62 = vmul.f32 %v3577_v58, %v3577_v58 }
0x1d65   :  { %v3578_v60 = vmul.f32 %v3576_v59, %v3576_v59 }
0x1d66   :  { %v3583_v18 = vsel %vm159_vm2, %v3579_v62, 0.0 }
0x1d67   :  { %v3580_v61 = vsel %vm159_vm2, %v3578_v60, 0.0 }
0x1d68   :  { %3581 = vadd.xlane.f32.xlu0 %v3580_v61 }
0x1d6c   :  { %3584 = vadd.xlane.f32.xlu0 %v3583_v18 }
0x1df5   :  { %v3582_v2 = vpop.xlane.xlu0 %3581 }
0x1df6   :  { %v3586_v3 = vmul.f32 0.03125, %v3582_v2 }
0x1df8   :  { %v3588_v4 = vadd.f32 1e-05, %v3586_v3 }
0x1df9   :  { %v3585_v5 = vpop.xlane.xlu0 %3584 }
0x1dfa   :  { %4709 = vrsqrt.f32 %v3588_v4  ;;  %v3587_v6 = vmul.f32 0.03125, %v3585_v5 }
0x1dfc   :  { %v3589_v7 = vadd.f32 1e-05, %v3587_v6 }
0x1dfe   :  { %4711 = vrsqrt.f32 %v3589_v7 }
0x1e04   :  { %v4710_v17 = vpop.eup %4709 }
0x1e05   :  { %v3592_v10 = vmul.f32 %v4710_v17, %v3576_v59 }
0x1e07   :  { %v3600_v16 = vmul.f32 %v4092_v8, %v3592_v10 }
0x1e08   :  { %v4712_v20 = vpop.eup %4711 }
0x1e09   :  { %v3593_v21 = vmul.f32 %v4712_v20, %v3577_v58  ;;  %v5344_v23 = vadd.f32 %v4093_v11, %v3600_v16 }
0x1e0b   :  { %v3601_v19 = vmul.f32 %v4092_v8, %v3593_v21  ;;  %4497 = vmatprep.mubr.msk.f32.mxu0 %vm159_vm2, %v5344_v23 }
0x1e0d   :  { %v5348_v25 = vadd.f32 %v4093_v11, %v3601_v19 }
0x1e0f   :  { %4498 = vmatmul.mubr.msk.f32.vlgmr.msra.gmra.mrb[44].mxu0 %vm159_vm2, %v5348_v25 }
0x1e10   :  { %4527 = vmatprep.mubr.msk.f32.mxu0 %vm4722_vm3, %v4721_v14  ;;  %v4598_v14 = vpack.c.bf16 %v4107_v29, %v4106_v28 }
0x1e12   :  { %4599 = vmatprep.subr.bf16.mxu1 %v4598_v14 }
0x1e13   :  { %4601 = vmatpush3.bf16.msra.mxu1 %v4598_v14 }
0x1e14   :  { %4603 = vmatprep.subr.bf16.mxu1 %v4602_v32 }
0x1e17   :  { %4605 = vmatpush3.bf16.msra.mxu1 %v4602_v32 }
0x1e18   :  { %4607 = vmatprep.subr.bf16.mxu1 %v4606_v35 }
0x1e1b   :  { %4609 = vmatpush3.bf16.msra.mxu1 %v4606_v35 }
0x1ee2   :  { %v4499_v37 = vpop.f32.mrb[44].mxu0 }
0x1ee3   :  { %v3701_v39 = vadd.f32 %v4499_v37, %v4099_v36  ;;  %v3695_v41 = vpop.f32.mrb[45].mxu0  ;;  %v4113_v37 = vld [vmem:[%s5429_s12 + $0x1] ss:$0 sm:$0xff] }
0x1ee4   :  { %v3696_v42 = vadd.f32 %v4099_v36, %v3695_v41 }
0x1ee5   :  { %v3707_v43 = vmul.f32 0.70710677, %v3701_v39  ;;  %v3705_v34 = vmul.f32 0.5, %v3701_v39 }
0x1ee6   :  { %v3706_v40 = vmul.f32 0.70710677, %v3696_v42  ;;  %v3704_v32 = vmul.f32 0.5, %v3696_v42 }
0x1ee7   :  { %v4103_v38 = vclamps-f32 %v3707_v43, 4.0 }
0x1ee8   :  { %v4102_v44 = vclamps-f32 %v3706_v40, 4.0 }
0x1ee9   :  { %v3713_v45 = vmul.f32 %v4103_v38, %v4103_v38 }
0x1eea   :  { %v3712_v53 = vmul.f32 %v4102_v44, %v4102_v44 }
0x1eeb   :  { %v3731_v50 = vmul.f32 -1.1791603e-07, %v3713_v45  ;;  %v3715_v46 = vmul.f32 0.00022905065, %v3713_v45 }
0x1eec   :  { %v3730_v47 = vmul.f32 -1.1791603e-07, %v3712_v53  ;;  %v3714_v49 = vmul.f32 0.00022905065, %v3712_v53 }
0x1eed   :  { %v3733_v48 = vadd.f32 2.3547966e-05, %v3731_v50  ;;  %v3717_v55 = vadd.f32 0.003408291, %v3715_v46 }
0x1eee   :  { %v3732_v51 = vadd.f32 2.3547966e-05, %v3730_v47  ;;  %v3716_v22 = vadd.f32 0.003408291, %v3714_v49 }
0x1eef   :  { %v3735_v52 = vmul.f32 %v3733_v48, %v3713_v45  ;;  %v3719_v58 = vmul.f32 %v3717_v55, %v3713_v45 }
0x1ef0   :  { %v3734_v54 = vmul.f32 %v3732_v51, %v3712_v53  ;;  %v3718_v61 = vmul.f32 %v3716_v22, %v3712_v53  ;;  %v4737_v22 = vmov 0.0|0.0  }
0x1ef1   :  { %v3737_v24 = vadd.f32 0.0010179626, %v3735_v52  ;;  %v3721_v9 = vadd.f32 0.050955694, %v3719_v58  ;;  %4610 = vmatprep.subr.bf16.mxu0 %v4737_v22 }
0x1ef2   :  { %v3736_v56 = vadd.f32 0.0010179626, %v3734_v54  ;;  %v3720_v12 = vadd.f32 0.050955694, %v3718_v61  ;;  %v3911_v54 = vld [vmem:[%s5432_s15 + $0x8] sm:$0xff] }
0x1ef3   :  { %v3739_v57 = vmul.f32 %v3737_v24, %v3713_v45  ;;  %v3723_v2 = vmul.f32 %v3721_v9, %v3713_v45  ;;  %v3912_v24 = vld [vmem:[%s5432_s15 + $0x10] sm:$0xff] }
0x1ef4   :  { %v3738_v59 = vmul.f32 %v3736_v56, %v3712_v53  ;;  %v3722_v5 = vmul.f32 %v3720_v12, %v3712_v53 }
0x1ef5   :  { %v3741_v60 = vadd.f32 0.01407047, %v3739_v57  ;;  %v3725_v17 = vadd.f32 0.18520832, %v3723_v2  ;;  %v3913_v57 = vld [vmem:[%s5432_s15 + $0x18] sm:$0xff] }
0x1ef6   :  { %v3740_v62 = vadd.f32 0.01407047, %v3738_v59  ;;  %v3724_v11 = vadd.f32 0.18520832, %v3722_v5  ;;  %v4614_v58 = vpack.c.bf16 %v3913_v57, %v3912_v24 }
0x1ef7   :  { %v3743_v18 = vmul.f32 %v3741_v60, %v3713_v45  ;;  %v3727_v20 = vmul.f32 %v3725_v17, %v3713_v45 }
0x1ef8   :  { %v3742_v63 = vmul.f32 %v3740_v62, %v3712_v53  ;;  %v3726_v21 = vmul.f32 %v3724_v11, %v3712_v53 }
0x1ef9   :  { %v3745_v13 = vadd.f32 0.11098505, %v3743_v18  ;;  %v3729_v19 = vadd.f32 1.1283791, %v3727_v20 }
0x1efa   :  { %v3744_v0 = vadd.f32 0.11098505, %v3742_v63  ;;  %v3728_v15 = vadd.f32 1.1283791, %v3726_v21 }
0x1efb   :  { %v3747_v1 = vmul.f32 %v3745_v13, %v3713_v45  ;;  %v3755_v26 = vmul.f32 %v4103_v38, %v3729_v19  ;;  %v4118_v13 = vld [vmem:[%s5430_s13 + $0x1] ss:$0 sm:$0xff] }
0x1efc   :  { %v3746_v3 = vmul.f32 %v3744_v0, %v3712_v53  ;;  %v3754_v28 = vmul.f32 %v4102_v44, %v3728_v15 }
0x1efd   :  { %v3749_v4 = vadd.f32 0.49746925, %v3747_v1  ;;  %v4119_v1 = vld [vmem:[%s5431_s14 + $0x1] ss:$0 sm:$0xff] }
0x1efe   :  { %v3748_v6 = vadd.f32 0.49746925, %v3746_v3 }
0x1eff   :  { %v3751_v7 = vmul.f32 %v3749_v4, %v3713_v45 }
0x1f00   :  { %v3750_v8 = vmul.f32 %v3748_v6, %v3712_v53 }
0x1f01   :  { %v3753_v10 = vadd.f32 1.0, %v3751_v7 }
0x1f02   :  { %v3752_v16 = vadd.f32 1.0, %v3750_v8 }
0x1f03   :  { %4713 = vrcp.f32 %v3753_v10  ;;  %v4120_v10 = vld [vmem:[%s5433_s16] ss:$0 sm:$0xff] }
0x1f04   :  { %4715 = vrcp.f32 %v3752_v16 }
0x1f0d   :  { %v4714_v27 = vpop.eup %4713 }
0x1f0e   :  { %v4716_v29 = vpop.eup %4715  ;;  %v3759_v14 = vmul.f32 %v4714_v27, %v3755_v26 }
0x1f0f   :  { %v3757_v30 = vmul.f32 %v4716_v29, %v3754_v28 }
0x1f10   :  { %v3761_v31 = vadd.f32 1.0, %v3759_v14 }
0x1f11   :  { %v3760_v33 = vadd.f32 1.0, %v3757_v30 }
0x1f12   :  { %v3763_v36 = vmul.f32 %v3761_v31, %v3705_v34 }
0x1f13   :  { %v3762_v35 = vmul.f32 %v3760_v33, %v3704_v32 }
0x1f15   :  { %4516 = vmatprep.mubr.msk.f32.mxu1 %vm1898_vm7, %v3762_v35 }
0x1f16   :  { %4517 = vmatmul.mubr.msk.f32.vlgmr.msra.gmra.mrb[34].mxu1 %vm1898_vm7, %v3763_v36 }
0x1fe9   :  { %v4518_v41 = vpop.f32.mrb[34].mxu1 }
0x1fea   :  { %v3859_v43 = vadd.f32 %v4518_v41, %v4113_v37  ;;  %v3853_v40 = vpop.f32.mrb[35].mxu1 }
0x1feb   :  { %v3854_v38 = vadd.f32 %v4113_v37, %v3853_v40 }
0x1fec   :  { %v3863_v44 = vadd.f32 %v3859_v43, %v5348_v25 }
0x1fed   :  { %v3862_v42 = vadd.f32 %v3854_v38, %v5344_v23  ;;  %v3910_v23 = vld [vmem:[%s5432_s15] sm:$0xff] }
0x1fee   :  { %v3871_v39 = vsel %vm159_vm2, %v3863_v44, 0.0  ;;  %v4611_v56 = vpack.c.bf16 %v3911_v54, %v3910_v23 }
0x1fef   :  { %3872 = vadd.xlane.f32.xlu0 %v3871_v39  ;;  %v3868_v45 = vsel %vm159_vm2, %v3862_v42, 0.0 }
0x1ff0   :  { %3869 = vadd.xlane.f32.xlu1 %v3868_v45  ;;  %4612 = vmatpush3.bf16.msra.mxu0 %v4611_v56 }
0x1ff1   :  { %4613 = vmatprep.subr.bf16.mxu0 %v4737_v22 }
0x1ff4   :  { %4615 = vmatpush3.bf16.msra.mxu0 %v4614_v58 }
0x207c   :  { %v3873_v53 = vpop.xlane.xlu0 %3872 }
0x207d   :  { %v3875_v50 = vmul.f32 0.03125, %v3873_v53  ;;  %v3870_v46 = vpop.xlane.xlu1 %3869 }
0x207e   :  { %v3874_v47 = vmul.f32 0.03125, %v3870_v46 }
0x207f   :  { %v3877_v48 = vsub.f32 %v3863_v44, %v3875_v50 }
0x2080   :  { %v3876_v49 = vsub.f32 %v3862_v42, %v3874_v47 }
0x2081   :  { %v3879_v51 = vmul.f32 %v3877_v48, %v3877_v48 }
0x2082   :  { %v3878_v52 = vmul.f32 %v3876_v49, %v3876_v49 }
0x2083   :  { %v3883_v55 = vsel %vm159_vm2, %v3879_v51, 0.0 }
0x2084   :  { %3884 = vadd.xlane.f32.xlu0 %v3883_v55  ;;  %v3880_v25 = vsel %vm159_vm2, %v3878_v52, 0.0 }
0x2085   :  { %3881 = vadd.xlane.f32.xlu1 %v3880_v25 }
0x2111   :  { %v3885_v59 = vpop.xlane.xlu0 %3884 }
0x2112   :  { %v3887_v60 = vmul.f32 0.03125, %v3885_v59  ;;  %v3882_v61 = vpop.xlane.xlu1 %3881 }
0x2113   :  { %v3886_v62 = vmul.f32 0.03125, %v3882_v61 }
0x2114   :  { %v3889_v18 = vadd.f32 1e-05, %v3887_v60 }
0x2115   :  { %v3888_v9 = vadd.f32 1e-05, %v3886_v62 }
0x2116   :  { %4717 = vrsqrt.f32 %v3889_v18 }
0x2117   :  { %4719 = vrsqrt.f32 %v3888_v9 }
0x2120   :  { %v4718_v63 = vpop.eup %4717 }
0x2121   :  { %v4720_v12 = vpop.eup %4719  ;;  %v3893_v0 = vmul.f32 %v4718_v63, %v3877_v48 }
0x2122   :  { %v3892_v2 = vmul.f32 %v4720_v12, %v3876_v49 }
0x2123   :  { %v3901_v3 = vmul.f32 %v4118_v13, %v3893_v0 }
0x2124   :  { %v3900_v4 = vmul.f32 %v4118_v13, %v3892_v2 }
0x2125   :  { %v3909_v5 = vadd.f32 %v4119_v1, %v3901_v3 }
0x2126   :  { %v3908_v6 = vadd.f32 %v4119_v1, %v3900_v4 }
0x2127   :  { %v3924_v7 = vrot.slane %v3909_v5, 6 }
0x2128   :  { %v3923_v17 = vrot.slane %v3908_v6, 7 }
0x212a   :  { %v3926_v8 = vsel %vm3925_vm8, %v3924_v7, %v3923_v17 }
0x212b   :  { %4528 = vmatmul.mubr.msk.f32.vlgmr.msra.gmra.mrb[46].mxu0 %vm159_vm2, %v3926_v8 }
0x21fe   :  { %v3995_v11 = vpop.f32.mrb[46].mxu0 }
0x21ff   :  { %v3996_v16 = vadd.f32 %v4120_v10, %v3995_v11  ;;  %v4529_v20 = vpop.f32.mrb[47].mxu0 }
0x2201   :  { %4000 = vst.msk [vmem:[%s5434_s17] sm:$0x3] %vm3999_vm9, %v3996_v16 }

</bundles_post_ra>
